<compile_context>
chip_gen: v6e
topology: v6e:2x2x1
jax: 0.10.0
libtpu: 0.0.40
codegen_flags: <defaults>
</compile_context>

<pallas_src>
import math
import functools

import jax
import jax.numpy as jnp
from jax.experimental import pallas as pl
from jax.experimental.pallas import tpu as pltpu


def _layernorm(x, gamma, beta, eps=1e-5):
    # x: (T, C) f32, gamma/beta: (1, C) f32
    mean = jnp.mean(x, axis=-1, keepdims=True)
    var = jnp.mean((x - mean) ** 2, axis=-1, keepdims=True)
    xhat = (x - mean) * jax.lax.rsqrt(var + eps)
    return xhat * gamma + beta


def _gelu_tanh(x):
    # PyTorch nn.GELU(approximate='tanh')
    c = 0.7978845608028654  # sqrt(2/pi)
    return 0.5 * x * (1.0 + jnp.tanh(c * (x + 0.044715 * x * x * x)))


def block_kernel(
    x_ref,
    ln1_g_ref, ln1_b_ref,
    w_attn_ref, b_attn_ref,
    w_proj_ref, b_proj_ref,
    ln2_g_ref, ln2_b_ref,
    w_fc_ref, b_fc_ref,
    w_mproj_ref, b_mproj_ref,
    o_ref,
    k_scr, v_scr, m_scr, l_scr, acc_scr,
    *, n_head, tq,
):
    t = pl.program_id(1)
    C = x_ref.shape[-1]
    hd = C // n_head
    scale = 1.0 / math.sqrt(hd)
    q0 = pl.multiple_of(t * tq, tq)

    # ---- ln_1 + QKV projection on this (tq, C) slice only (bf16 MXU, f32 acc) ----
    x_tile = x_ref[0]                                               # (tq, C) f32
    xn = _layernorm(x_tile, ln1_g_ref[...], ln1_b_ref[...])
    qkv = jnp.dot(xn.astype(jnp.bfloat16), w_attn_ref[...],
                  preferred_element_type=jnp.float32) + b_attn_ref[...]

    def heads(a2d):
        # (tq, n_head*hd) -> head-major (n_head, tq, hd); static lane slices
        return jnp.stack([a2d[:, h * hd:(h + 1) * hd] for h in range(n_head)],
                         axis=0)

    q_h = heads(qkv[:, :C]).astype(jnp.bfloat16)                    # (H, tq, hd)
    # Append this tile's K/V rows to the per-batch-element scratch (single
    # lane-dense dynamic store per tensor; earlier rows were written by
    # earlier, sequential t steps of the same batch element).
    k_scr[:, pl.ds(q0, tq), :] = heads(qkv[:, C:2 * C]).astype(jnp.bfloat16)
    v_scr[:, pl.ds(q0, tq), :] = heads(qkv[:, 2 * C:]).astype(jnp.bfloat16)

    # ---- flash-style causal attention over key tiles 0..t (online softmax) ----
    m_scr[...] = jnp.full(m_scr.shape, -1e30, jnp.float32)
    l_scr[...] = jnp.zeros(l_scr.shape, jnp.float32)
    acc_scr[...] = jnp.zeros(acc_scr.shape, jnp.float32)

    row = jax.lax.broadcasted_iota(jnp.int32, (tq, tq), 0)
    col = jax.lax.broadcasted_iota(jnp.int32, (tq, tq), 1)

    @pl.loop(0, t + 1)                 # key tiles above the diagonal are skipped
    def _(kt_idx):
        k0 = pl.multiple_of(kt_idx * tq, tq)
        kt = k_scr[:, pl.ds(k0, tq), :]                             # (H, tq, hd) bf16
        vt = v_scr[:, pl.ds(k0, tq), :]
        s = jnp.einsum('hqd,hkd->hqk', q_h, kt,
                       preferred_element_type=jnp.float32) * scale  # (H, tq, tq)
        # Only the diagonal tile (kt_idx == t) actually has masked entries.
        keep = jnp.logical_or(kt_idx < t, row >= col)
        s = jnp.where(keep[None], s, -1e30)

        m_new = jnp.maximum(m_scr[...], s.max(-1, keepdims=True))
        alpha = jnp.exp(m_scr[...] - m_new)
        p = jnp.exp(s - m_new)
        l_scr[...] = alpha * l_scr[...] + p.sum(-1, keepdims=True)
        acc_scr[...] = alpha * acc_scr[...] + jnp.einsum(
            'hqk,hkd->hqd', p.astype(jnp.bfloat16), vt,
            preferred_element_type=jnp.float32)
        m_scr[...] = m_new

    y = acc_scr[...] * pl.reciprocal(l_scr[...], approx=True)       # (H, tq, hd) f32
    # Merge heads along lanes as a value (no scratch round trip), then one
    # full-depth (tq, C) x (C, C) output projection on the MXU.
    y_merged = jnp.concatenate([y[h] for h in range(n_head)], axis=-1)
    attn_out = jnp.dot(y_merged.astype(jnp.bfloat16), w_proj_ref[...],
                       preferred_element_type=jnp.float32) + b_proj_ref[...]
    x1 = x_tile + attn_out                                           # residual 1 (f32)

    # ---- ln_2 + MLP ----
    x1n = _layernorm(x1, ln2_g_ref[...], ln2_b_ref[...])
    h1 = jnp.dot(x1n.astype(jnp.bfloat16), w_fc_ref[...],
                 preferred_element_type=jnp.float32) + b_fc_ref[...]
    h1 = _gelu_tanh(h1)
    m_out = jnp.dot(h1.astype(jnp.bfloat16), w_mproj_ref[...],
                    preferred_element_type=jnp.float32) + b_mproj_ref[...]

    o_ref[0] = (x1 + m_out).astype(o_ref.dtype)                      # residual 2


def gpt2_block(x, params, n_head, *, tq=None, vmem_limit_bytes=None):
    """x: (B, T, C) f32.  Weights in `params` are bf16, biases / LN params f32."""
    B, T, C = x.shape
    assert C % n_head == 0
    hd = C // n_head
    (ln1_g, ln1_b, w_attn, b_attn, w_proj, b_proj,
     ln2_g, ln2_b, w_fc, b_fc, w_mproj, b_mproj) = params

    # Query/key tile: bounds the per-step working set ((H,tq,tq) scores,
    # (tq,4C) MLP hidden).  tq=512 is a good default on 128 MiB parts (v5e/v6e)
    # once causal k-tiling is in place; 256 is safe everywhere incl. v7x.
    if tq is None:
        tq = T if T <= 256 else 256
    if T % tq != 0:
        tq = T
    nt = T // tq
    # bf16 K/V rows are appended at sublane offset q0 = t*tq; keep it aligned
    # to the bf16 (16,128) packing whenever there is more than one tile.
    assert nt == 1 or tq % 16 == 0, "tq must be a multiple of 16 when T > tq"

    def _const_spec(a):
        # Constant (never re-fetched) weight/bias input: single-buffer it.
        nd = a.ndim
        imap = lambda b, t, _nd=nd: (0,) * _nd
        try:
            return pl.BlockSpec(a.shape, imap, pipeline_mode=pl.Buffered(1))
        except Exception:  # older BlockSpec without pipeline_mode
            return pl.BlockSpec(a.shape, imap)

    kernel = functools.partial(block_kernel, n_head=n_head, tq=tq)

    cp_kwargs = dict(dimension_semantics=("parallel", "arbitrary"))
    if vmem_limit_bytes is not None:
        # For real GPT-2 sizes raise this above the scoped default (16 MiB on
        # v5e, 32 MiB on v6e/v7x) so the resident bf16 weights + tiles fit.
        cp_kwargs["vmem_limit_bytes"] = vmem_limit_bytes

    flops = int(24 * B * T * C * C + 2 * B * T * T * C)              # causal attn ~half
    transcendentals = int(B * n_head * T * T // 2 + 4 * B * T * C)
    w_bytes = 2 * (3 * C * C + C * C + 4 * C * C + 4 * C * C) + 4 * (13 * C)
    bytes_accessed = int(2 * B * T * C * 4 + w_bytes)
    cost = pl.CostEstimate(flops=flops, transcendentals=transcendentals,
                           bytes_accessed=bytes_accessed)

    return pl.pallas_call(
        kernel,
        out_shape=jax.ShapeDtypeStruct((B, T, C), x.dtype),
        grid_spec=pltpu.PrefetchScalarGridSpec(
            num_scalar_prefetch=0,
            grid=(B, nt),   # t must stay innermost & sequential (K/V scratch reuse)
            in_specs=[
                pl.BlockSpec((1, tq, C), lambda b, t: (b, t, 0)),    # x tile
                _const_spec(ln1_g), _const_spec(ln1_b),
                _const_spec(w_attn), _const_spec(b_attn),
                _const_spec(w_proj), _const_spec(b_proj),
                _const_spec(ln2_g), _const_spec(ln2_b),
                _const_spec(w_fc), _const_spec(b_fc),
                _const_spec(w_mproj), _const_spec(b_mproj),
            ],
            out_specs=pl.BlockSpec((1, tq, C), lambda b, t: (b, t, 0)),
            scratch_shapes=[
                pltpu.VMEM((n_head, T, hd), jnp.bfloat16),   # K, head-major
                pltpu.VMEM((n_head, T, hd), jnp.bfloat16),   # V, head-major
                pltpu.VMEM((n_head, tq, 1), jnp.float32),    # running max m
                pltpu.VMEM((n_head, tq, 1), jnp.float32),    # running denom l
                pltpu.VMEM((n_head, tq, hd), jnp.float32),   # output accumulator
            ],
        ),
        compiler_params=pltpu.CompilerParams(**cp_kwargs),
        cost_estimate=cost,
    )(x, ln1_g, ln1_b, w_attn, b_attn, w_proj, b_proj,
      ln2_g, ln2_b, w_fc, b_fc, w_mproj, b_mproj)


def init_params(key, n_embd):
    ks = jax.random.split(key, 6)
    s = 0.02
    bf16 = jnp.bfloat16
    ln1_g = jnp.ones((1, n_embd), jnp.float32)
    ln1_b = jnp.zeros((1, n_embd), jnp.float32)
    w_attn = (s * jax.random.normal(ks[0], (n_embd, 3 * n_embd), jnp.float32)).astype(bf16)
    b_attn = s * jax.random.normal(ks[1], (1, 3 * n_embd), jnp.float32)
    w_proj = (s * jax.random.normal(ks[2], (n_embd, n_embd), jnp.float32)).astype(bf16)
    b_proj = s * jax.random.normal(ks[3], (1, n_embd), jnp.float32)
    ln2_g = jnp.ones((1, n_embd), jnp.float32)
    ln2_b = jnp.zeros((1, n_embd), jnp.float32)
    w_fc = (s * jax.random.normal(ks[4], (n_embd, 4 * n_embd), jnp.float32)).astype(bf16)
    b_fc = jnp.zeros((1, 4 * n_embd), jnp.float32)
    w_mproj = (s * jax.random.normal(ks[5], (4 * n_embd, n_embd), jnp.float32)).astype(bf16)
    b_mproj = jnp.zeros((1, n_embd), jnp.float32)
    return (ln1_g, ln1_b, w_attn, b_attn, w_proj, b_proj,
            ln2_g, ln2_b, w_fc, b_fc, w_mproj, b_mproj)


def ref_block(x, params, n_head):
    """Pure-JAX f32 reference mirroring the PyTorch Block forward."""
    (ln1_g, ln1_b, w_attn, b_attn, w_proj, b_proj,
     ln2_g, ln2_b, w_fc, b_fc, w_mproj, b_mproj) = params
    f32 = lambda a: a.astype(jnp.float32)

    def ln(z, g, b):
        m = z.mean(-1, keepdims=True)
        v = ((z - m) ** 2).mean(-1, keepdims=True)
        return (z - m) * jax.lax.rsqrt(v + 1e-5) * g + b

    B, T, C = x.shape
    hd = C // n_head
    xn = ln(x, f32(ln1_g), f32(ln1_b))
    qkv = xn @ f32(w_attn) + f32(b_attn)
    q, k, v = jnp.split(qkv, 3, axis=-1)
    heads = lambda m: m.reshape(B, T, n_head, hd).transpose(0, 2, 1, 3)
    q, k, v = heads(q), heads(k), heads(v)
    att = (q @ k.transpose(0, 1, 3, 2)) * (1.0 / math.sqrt(hd))
    mask = jnp.tril(jnp.ones((T, T), bool))
    att = jnp.where(mask, att, -jnp.inf)
    att = jax.nn.softmax(att, axis=-1)
    y = (att @ v).transpose(0, 2, 1, 3).reshape(B, T, C)
    y = y @ f32(w_proj) + f32(b_proj)
    x1 = x + y
    x1n = ln(x1, f32(ln2_g), f32(ln2_b))
    h = x1n @ f32(w_fc) + f32(b_fc)
    h = 0.5 * h * (1.0 + jnp.tanh(0.7978845608028654 * (h + 0.044715 * h ** 3)))
    return x1 + (h @ f32(w_mproj) + f32(b_mproj))


if __name__ == "__main__":
    key = jax.random.PRNGKey(0)
    kx, kp, kx2 = jax.random.split(key, 3)

    # Config 1: small GPT-2-like block, single tile (nt=1): B=2, T=8, C=32, H=4
    B, T, C, H = 2, 8, 32, 4
    x = jax.random.normal(kx, (B, T, C), jnp.float32)
    params = init_params(kp, C)
    out = gpt2_block(x, params, H)
    jax.block_until_ready(out)
    assert out.shape == (B, T, C)
    err1 = float(jnp.max(jnp.abs(out - ref_block(x, params, H))))
    assert err1 < 5e-2, f"config1 max abs err vs f32 reference: {err1}"

    # Config 2: exercises the multi-tile path (causal key-tiling, per-tile K/V
    # scratch accumulation): T=32 with tq=16 -> 2 sequence tiles.
    T2 = 32
    x2 = jax.random.normal(kx2, (B, T2, C), jnp.float32)
    out2 = gpt2_block(x2, params, H, tq=16)
    jax.block_until_ready(out2)
    assert out2.shape == (B, T2, C)
    err2 = float(jnp.max(jnp.abs(out2 - ref_block(x2, params, H))))
    assert err2 < 5e-2, f"config2 max abs err vs f32 reference: {err2}"

    print("KERNEL_OK")
</pallas_src>

<mosaic_0001>
module attributes {stable_mosaic.version = 11 : i64} {
  func.func @block_kernel(%arg0: i32, %arg1: i32, %arg2: memref<1x8x32xf32, #tpu.memory_space<vmem>>, %arg3: memref<1x32xf32, #tpu.memory_space<vmem>>, %arg4: memref<1x32xf32, #tpu.memory_space<vmem>>, %arg5: memref<32x96xbf16, #tpu.memory_space<vmem>>, %arg6: memref<1x96xf32, #tpu.memory_space<vmem>>, %arg7: memref<32x32xbf16, #tpu.memory_space<vmem>>, %arg8: memref<1x32xf32, #tpu.memory_space<vmem>>, %arg9: memref<1x32xf32, #tpu.memory_space<vmem>>, %arg10: memref<1x32xf32, #tpu.memory_space<vmem>>, %arg11: memref<32x128xbf16, #tpu.memory_space<vmem>>, %arg12: memref<1x128xf32, #tpu.memory_space<vmem>>, %arg13: memref<128x32xbf16, #tpu.memory_space<vmem>>, %arg14: memref<1x32xf32, #tpu.memory_space<vmem>>, %arg15: memref<1x8x32xf32, #tpu.memory_space<vmem>>, %arg16: memref<4x8x8xbf16, #tpu.memory_space<vmem>>, %arg17: memref<4x8x8xbf16, #tpu.memory_space<vmem>>, %arg18: memref<4x8x1xf32, #tpu.memory_space<vmem>>, %arg19: memref<4x8x1xf32, #tpu.memory_space<vmem>>, %arg20: memref<4x8x8xf32, #tpu.memory_space<vmem>>) attributes {dimension_semantics = [#tpu.dimension_semantics<parallel>, #tpu.dimension_semantics<arbitrary>], iteration_bounds = array<i64: 2, 1>, scalar_prefetch = 0 : i64, scratch_operands = 5 : i64, tpu.core_type = #tpu.core_type<tc>, window_params = [{transform_indices = @transform_0, window_bounds = array<i64: 1, 8, 32>}, {pipeline_mode = #tpu.pipeline_mode<synchronous>, transform_indices = @transform_1, window_bounds = array<i64: 1, 32>}, {pipeline_mode = #tpu.pipeline_mode<synchronous>, transform_indices = @transform_2, window_bounds = array<i64: 1, 32>}, {pipeline_mode = #tpu.pipeline_mode<synchronous>, transform_indices = @transform_3, window_bounds = array<i64: 32, 96>}, {pipeline_mode = #tpu.pipeline_mode<synchronous>, transform_indices = @transform_4, window_bounds = array<i64: 1, 96>}, {pipeline_mode = #tpu.pipeline_mode<synchronous>, transform_indices = @transform_5, window_bounds = array<i64: 32, 32>}, {pipeline_mode = #tpu.pipeline_mode<synchronous>, transform_indices = @transform_6, window_bounds = array<i64: 1, 32>}, {pipeline_mode = #tpu.pipeline_mode<synchronous>, transform_indices = @transform_7, window_bounds = array<i64: 1, 32>}, {pipeline_mode = #tpu.pipeline_mode<synchronous>, transform_indices = @transform_8, window_bounds = array<i64: 1, 32>}, {pipeline_mode = #tpu.pipeline_mode<synchronous>, transform_indices = @transform_9, window_bounds = array<i64: 32, 128>}, {pipeline_mode = #tpu.pipeline_mode<synchronous>, transform_indices = @transform_10, window_bounds = array<i64: 1, 128>}, {pipeline_mode = #tpu.pipeline_mode<synchronous>, transform_indices = @transform_11, window_bounds = array<i64: 128, 32>}, {pipeline_mode = #tpu.pipeline_mode<synchronous>, transform_indices = @transform_12, window_bounds = array<i64: 1, 32>}, {transform_indices = @transform_13, window_bounds = array<i64: 1, 8, 32>}]} {
    %c8_i32 = arith.constant 8 : i32
    %0 = arith.muli %arg1, %c8_i32 : i32
    %1 = tpu.assume_multiple %0, 8 : i32
    %c0 = arith.constant 0 : index
    %c0_0 = arith.constant 0 : index
    %c0_1 = arith.constant 0 : index
    %2 = vector.load %arg2[%c0, %c0_0, %c0_1] : memref<1x8x32xf32, #tpu.memory_space<vmem>>, vector<1x8x32xf32>
    %3 = vector.shape_cast %2 : vector<1x8x32xf32> to vector<8x32xf32>
    %c0_2 = arith.constant 0 : index
    %c0_3 = arith.constant 0 : index
    %4 = vector.load %arg3[%c0_2, %c0_3] : memref<1x32xf32, #tpu.memory_space<vmem>>, vector<1x32xf32>
    %c0_4 = arith.constant 0 : index
    %c0_5 = arith.constant 0 : index
    %5 = vector.load %arg4[%c0_4, %c0_5] : memref<1x32xf32, #tpu.memory_space<vmem>>, vector<1x32xf32>
    %cst = arith.constant dense<0.000000e+00> : vector<8xf32>
    %6 = vector.multi_reduction <add>, %3, %cst [1] : vector<8x32xf32> to vector<8xf32>
    %7 = vector.shape_cast %6 : vector<8xf32> to vector<8x1xf32>
    %cst_6 = arith.constant 3.200000e+01 : f32
    %8 = vector.broadcast %cst_6 : f32 to vector<8x1xf32>
    %9 = arith.divf %7, %8 : vector<8x1xf32>
    %10 = vector.broadcast %9 : vector<8x1xf32> to vector<8x32xf32>
    %11 = arith.subf %3, %10 : vector<8x32xf32>
    %12 = arith.mulf %11, %11 : vector<8x32xf32>
    %cst_7 = arith.constant dense<0.000000e+00> : vector<8xf32>
    %13 = vector.multi_reduction <add>, %12, %cst_7 [1] : vector<8x32xf32> to vector<8xf32>
    %14 = vector.shape_cast %13 : vector<8xf32> to vector<8x1xf32>
    %cst_8 = arith.constant 3.200000e+01 : f32
    %15 = vector.broadcast %cst_8 : f32 to vector<8x1xf32>
    %16 = arith.divf %14, %15 : vector<8x1xf32>
    %17 = vector.broadcast %9 : vector<8x1xf32> to vector<8x32xf32>
    %18 = arith.subf %3, %17 : vector<8x32xf32>
    %cst_9 = arith.constant 9.99999974E-6 : f32
    %19 = vector.broadcast %cst_9 : f32 to vector<8x1xf32>
    %20 = arith.addf %16, %19 : vector<8x1xf32>
    %21 = math.rsqrt %20 : vector<8x1xf32>
    %22 = vector.broadcast %21 : vector<8x1xf32> to vector<8x32xf32>
    %23 = arith.mulf %18, %22 : vector<8x32xf32>
    %24 = vector.broadcast %4 : vector<1x32xf32> to vector<8x32xf32>
    %25 = arith.mulf %23, %24 : vector<8x32xf32>
    %26 = vector.broadcast %5 : vector<1x32xf32> to vector<8x32xf32>
    %27 = arith.addf %25, %26 : vector<8x32xf32>
    %28 = arith.truncf %27 : vector<8x32xf32> to vector<8x32xbf16>
    %c0_10 = arith.constant 0 : index
    %c0_11 = arith.constant 0 : index
    %29 = vector.load %arg5[%c0_10, %c0_11] : memref<32x96xbf16, #tpu.memory_space<vmem>>, vector<32x96xbf16>
    %cst_12 = arith.constant dense<0.000000e+00> : vector<8x96xf32>
    %30 = tpu.matmul %28, %29, %cst_12 {dimension_numbers = #tpu.dot_dimension_numbers<[1], [0], [0], [1], [0, 0, 1, 1], [], []>} : vector<8x32xbf16>, vector<32x96xbf16>, vector<8x96xf32> -> vector<8x96xf32>
    %c0_13 = arith.constant 0 : index
    %c0_14 = arith.constant 0 : index
    %31 = vector.load %arg6[%c0_13, %c0_14] : memref<1x96xf32, #tpu.memory_space<vmem>>, vector<1x96xf32>
    %32 = vector.broadcast %31 : vector<1x96xf32> to vector<8x96xf32>
    %33 = arith.addf %30, %32 : vector<8x96xf32>
    %34 = vector.extract_strided_slice %33 {offsets = [0, 0], sizes = [8, 32], strides = [1, 1]} : vector<8x96xf32> to vector<8x32xf32>
    %35 = vector.extract_strided_slice %34 {offsets = [0, 0], sizes = [8, 8], strides = [1, 1]} : vector<8x32xf32> to vector<8x8xf32>
    %36 = vector.extract_strided_slice %34 {offsets = [0, 8], sizes = [8, 8], strides = [1, 1]} : vector<8x32xf32> to vector<8x8xf32>
    %37 = vector.extract_strided_slice %34 {offsets = [0, 16], sizes = [8, 8], strides = [1, 1]} : vector<8x32xf32> to vector<8x8xf32>
    %38 = vector.extract_strided_slice %34 {offsets = [0, 24], sizes = [8, 8], strides = [1, 1]} : vector<8x32xf32> to vector<8x8xf32>
    %39 = vector.shape_cast %35 : vector<8x8xf32> to vector<1x8x8xf32>
    %40 = vector.shape_cast %36 : vector<8x8xf32> to vector<1x8x8xf32>
    %41 = vector.shape_cast %37 : vector<8x8xf32> to vector<1x8x8xf32>
    %42 = vector.shape_cast %38 : vector<8x8xf32> to vector<1x8x8xf32>
    %43 = tpu.concatenate %39, %40, %41, %42 in 0 : vector<1x8x8xf32>, vector<1x8x8xf32>, vector<1x8x8xf32>, vector<1x8x8xf32> -> vector<4x8x8xf32>
    %44 = arith.truncf %43 : vector<4x8x8xf32> to vector<4x8x8xbf16>
    %45 = vector.extract_strided_slice %33 {offsets = [0, 32], sizes = [8, 32], strides = [1, 1]} : vector<8x96xf32> to vector<8x32xf32>
    %46 = vector.extract_strided_slice %45 {offsets = [0, 0], sizes = [8, 8], strides = [1, 1]} : vector<8x32xf32> to vector<8x8xf32>
    %47 = vector.extract_strided_slice %45 {offsets = [0, 8], sizes = [8, 8], strides = [1, 1]} : vector<8x32xf32> to vector<8x8xf32>
    %48 = vector.extract_strided_slice %45 {offsets = [0, 16], sizes = [8, 8], strides = [1, 1]} : vector<8x32xf32> to vector<8x8xf32>
    %49 = vector.extract_strided_slice %45 {offsets = [0, 24], sizes = [8, 8], strides = [1, 1]} : vector<8x32xf32> to vector<8x8xf32>
    %50 = vector.shape_cast %46 : vector<8x8xf32> to vector<1x8x8xf32>
    %51 = vector.shape_cast %47 : vector<8x8xf32> to vector<1x8x8xf32>
    %52 = vector.shape_cast %48 : vector<8x8xf32> to vector<1x8x8xf32>
    %53 = vector.shape_cast %49 : vector<8x8xf32> to vector<1x8x8xf32>
    %54 = tpu.concatenate %50, %51, %52, %53 in 0 : vector<1x8x8xf32>, vector<1x8x8xf32>, vector<1x8x8xf32>, vector<1x8x8xf32> -> vector<4x8x8xf32>
    %55 = arith.truncf %54 : vector<4x8x8xf32> to vector<4x8x8xbf16>
    %c0_15 = arith.constant 0 : index
    %56 = arith.index_cast %1 : i32 to index
    %c0_16 = arith.constant 0 : index
    %57 = vector.load %arg16[%c0_15, %56, %c0_16] : memref<4x8x8xbf16, #tpu.memory_space<vmem>>, vector<4x8x8xbf16>
    tpu.vector_store %arg16[%c0_15, %56, %c0_16], %55 {strides = array<i32>} : memref<4x8x8xbf16, #tpu.memory_space<vmem>>, vector<4x8x8xbf16>,
    %58 = vector.extract_strided_slice %33 {offsets = [0, 64], sizes = [8, 32], strides = [1, 1]} : vector<8x96xf32> to vector<8x32xf32>
    %59 = vector.extract_strided_slice %58 {offsets = [0, 0], sizes = [8, 8], strides = [1, 1]} : vector<8x32xf32> to vector<8x8xf32>
    %60 = vector.extract_strided_slice %58 {offsets = [0, 8], sizes = [8, 8], strides = [1, 1]} : vector<8x32xf32> to vector<8x8xf32>
    %61 = vector.extract_strided_slice %58 {offsets = [0, 16], sizes = [8, 8], strides = [1, 1]} : vector<8x32xf32> to vector<8x8xf32>
    %62 = vector.extract_strided_slice %58 {offsets = [0, 24], sizes = [8, 8], strides = [1, 1]} : vector<8x32xf32> to vector<8x8xf32>
    %63 = vector.shape_cast %59 : vector<8x8xf32> to vector<1x8x8xf32>
    %64 = vector.shape_cast %60 : vector<8x8xf32> to vector<1x8x8xf32>
    %65 = vector.shape_cast %61 : vector<8x8xf32> to vector<1x8x8xf32>
    %66 = vector.shape_cast %62 : vector<8x8xf32> to vector<1x8x8xf32>
    %67 = tpu.concatenate %63, %64, %65, %66 in 0 : vector<1x8x8xf32>, vector<1x8x8xf32>, vector<1x8x8xf32>, vector<1x8x8xf32> -> vector<4x8x8xf32>
    %68 = arith.truncf %67 : vector<4x8x8xf32> to vector<4x8x8xbf16>
    %c0_17 = arith.constant 0 : index
    %69 = arith.index_cast %1 : i32 to index
    %c0_18 = arith.constant 0 : index
    %70 = vector.load %arg17[%c0_17, %69, %c0_18] : memref<4x8x8xbf16, #tpu.memory_space<vmem>>, vector<4x8x8xbf16>
    tpu.vector_store %arg17[%c0_17, %69, %c0_18], %68 {strides = array<i32>} : memref<4x8x8xbf16, #tpu.memory_space<vmem>>, vector<4x8x8xbf16>,
    %cst_19 = arith.constant -1.000000e+30 : f32
    %71 = vector.broadcast %cst_19 : f32 to vector<4x8x1xf32>
    %c0_20 = arith.constant 0 : index
    %c0_21 = arith.constant 0 : index
    %c0_22 = arith.constant 0 : index
    %72 = vector.load %arg18[%c0_20, %c0_21, %c0_22] : memref<4x8x1xf32, #tpu.memory_space<vmem>>, vector<4x8x1xf32>
    tpu.vector_store %arg18[%c0_20, %c0_21, %c0_22], %71 {strides = array<i32>} : memref<4x8x1xf32, #tpu.memory_space<vmem>>, vector<4x8x1xf32>,
    %cst_23 = arith.constant 0.000000e+00 : f32
    %73 = vector.broadcast %cst_23 : f32 to vector<4x8x1xf32>
    %c0_24 = arith.constant 0 : index
    %c0_25 = arith.constant 0 : index
    %c0_26 = arith.constant 0 : index
    %74 = vector.load %arg19[%c0_24, %c0_25, %c0_26] : memref<4x8x1xf32, #tpu.memory_space<vmem>>, vector<4x8x1xf32>
    tpu.vector_store %arg19[%c0_24, %c0_25, %c0_26], %73 {strides = array<i32>} : memref<4x8x1xf32, #tpu.memory_space<vmem>>, vector<4x8x1xf32>,
    %cst_27 = arith.constant 0.000000e+00 : f32
    %75 = vector.broadcast %cst_27 : f32 to vector<4x8x8xf32>
    %c0_28 = arith.constant 0 : index
    %c0_29 = arith.constant 0 : index
    %c0_30 = arith.constant 0 : index
    %76 = vector.load %arg20[%c0_28, %c0_29, %c0_30] : memref<4x8x8xf32, #tpu.memory_space<vmem>>, vector<4x8x8xf32>
    tpu.vector_store %arg20[%c0_28, %c0_29, %c0_30], %75 {strides = array<i32>} : memref<4x8x8xf32, #tpu.memory_space<vmem>>, vector<4x8x8xf32>,
    %77 = tpu.iota {dimensions = array<i32: 0>} : vector<8x8xi32>
    %78 = tpu.iota {dimensions = array<i32: 1>} : vector<8x8xi32>
    %c1_i32 = arith.constant 1 : i32
    %79 = arith.addi %arg1, %c1_i32 : i32
    %c0_i32 = arith.constant 0 : i32
    %80 = arith.subi %79, %c0_i32 : i32
    %c1_i32_31 = arith.constant 1 : i32
    %c1_i32_32 = arith.constant 1 : i32
    %81 = arith.subi %c1_i32_31, %c1_i32_32 : i32
    %82 = arith.addi %80, %81 : i32
    %c1_i32_33 = arith.constant 1 : i32
    %83 = arith.divsi %82, %c1_i32_33 : i32
    %c1_i32_34 = arith.constant 1 : i32
    %c0_i32_35 = arith.constant 0 : i32
    %c0_i32_36 = arith.constant 0 : i32
    %84 = arith.subi %83, %c0_i32_36 : i32
    %85 = arith.addi %c0_i32_36, %84 : i32
    %c1_i32_37 = arith.constant 1 : i32
    scf.for %arg21 = %c0_i32_36 to %85 step %c1_i32_37  : i32 {
      %160 = arith.muli %arg21, %c1_i32_34 : i32
      %161 = arith.addi %c0_i32_35, %160 : i32
      %c8_i32_75 = arith.constant 8 : i32
      %162 = arith.muli %161, %c8_i32_75 : i32
      %163 = tpu.assume_multiple %162, 8 : i32
      %c0_76 = arith.constant 0 : index
      %164 = arith.index_cast %163 : i32 to index
      %c0_77 = arith.constant 0 : index
      %165 = vector.load %arg16[%c0_76, %164, %c0_77] : memref<4x8x8xbf16, #tpu.memory_space<vmem>>, vector<4x8x8xbf16>
      %c0_78 = arith.constant 0 : index
      %166 = arith.index_cast %163 : i32 to index
      %c0_79 = arith.constant 0 : index
      %167 = vector.load %arg17[%c0_78, %166, %c0_79] : memref<4x8x8xbf16, #tpu.memory_space<vmem>>, vector<4x8x8xbf16>
      "tpu.trace_start"() <{level = 10 : i32, message = "hqd,hkd->hqk"}> : () -> ()
      %cst_80 = arith.constant dense<0.000000e+00> : vector<4x8x8xf32>
      %168 = tpu.matmul %44, %165, %cst_80 {dimension_numbers = #tpu.dot_dimension_numbers<[2], [2], [1], [1], [0, 0, 0, 1, 1, 1], [0], [0]>} : vector<4x8x8xbf16>, vector<4x8x8xbf16>, vector<4x8x8xf32> -> vector<4x8x8xf32>
      "tpu.trace_stop"() : () -> ()
      %cst_81 = arith.constant 0.353553385 : f32
      %169 = vector.broadcast %cst_81 : f32 to vector<4x8x8xf32>
      %170 = arith.mulf %168, %169 : vector<4x8x8xf32>
      %171 = arith.cmpi slt, %161, %arg1 : i32
      %172 = arith.cmpi sge, %77, %78 : vector<8x8xi32>
      %173 = vector.broadcast %171 : i1 to vector<8x8xi1>
      %174 = arith.ori %173, %172 : vector<8x8xi1>
      %175 = vector.shape_cast %174 : vector<8x8xi1> to vector<1x8x8xi1>
      %cst_82 = arith.constant -1.000000e+30 : f32
      %176 = vector.shape_cast %175 : vector<1x8x8xi1> to vector<1x8x8xi1>
      %177 = vector.broadcast %176 : vector<1x8x8xi1> to vector<4x8x8xi1>
      %178 = vector.broadcast %cst_82 : f32 to vector<4x8x8xf32>
      %179 = arith.select %177, %170, %178 : vector<4x8x8xi1>, vector<4x8x8xf32>
      %c0_83 = arith.constant 0 : index
      %c0_84 = arith.constant 0 : index
      %c0_85 = arith.constant 0 : index
      %180 = vector.load %arg18[%c0_83, %c0_84, %c0_85] : memref<4x8x1xf32, #tpu.memory_space<vmem>>, vector<4x8x1xf32>
      %cst_86 = arith.constant dense<0xFF800000> : vector<4x8xf32>
      %181 = vector.multi_reduction <maximumf>, %179, %cst_86 [2] : vector<4x8x8xf32> to vector<4x8xf32>
      %182 = vector.shape_cast %181 : vector<4x8xf32> to vector<4x8x1xf32>
      %183 = arith.maximumf %180, %182 : vector<4x8x1xf32>
      %c0_87 = arith.constant 0 : index
      %c0_88 = arith.constant 0 : index
      %c0_89 = arith.constant 0 : index
      %184 = vector.load %arg18[%c0_87, %c0_88, %c0_89] : memref<4x8x1xf32, #tpu.memory_space<vmem>>, vector<4x8x1xf32>
      %185 = arith.subf %184, %183 : vector<4x8x1xf32>
      %186 = math.exp %185 : vector<4x8x1xf32>
      %187 = vector.broadcast %183 : vector<4x8x1xf32> to vector<4x8x8xf32>
      %188 = arith.subf %179, %187 : vector<4x8x8xf32>
      %189 = math.exp %188 : vector<4x8x8xf32>
      %c0_90 = arith.constant 0 : index
      %c0_91 = arith.constant 0 : index
      %c0_92 = arith.constant 0 : index
      %190 = vector.load %arg19[%c0_90, %c0_91, %c0_92] : memref<4x8x1xf32, #tpu.memory_space<vmem>>, vector<4x8x1xf32>
      %191 = arith.mulf %186, %190 : vector<4x8x1xf32>
      %cst_93 = arith.constant dense<0.000000e+00> : vector<4x8xf32>
      %192 = vector.multi_reduction <add>, %189, %cst_93 [2] : vector<4x8x8xf32> to vector<4x8xf32>
      %193 = vector.shape_cast %192 : vector<4x8xf32> to vector<4x8x1xf32>
      %194 = arith.addf %191, %193 : vector<4x8x1xf32>
      %c0_94 = arith.constant 0 : index
      %c0_95 = arith.constant 0 : index
      %c0_96 = arith.constant 0 : index
      %195 = vector.load %arg19[%c0_94, %c0_95, %c0_96] : memref<4x8x1xf32, #tpu.memory_space<vmem>>, vector<4x8x1xf32>
      tpu.vector_store %arg19[%c0_94, %c0_95, %c0_96], %194 {strides = array<i32>} : memref<4x8x1xf32, #tpu.memory_space<vmem>>, vector<4x8x1xf32>,
      %c0_97 = arith.constant 0 : index
      %c0_98 = arith.constant 0 : index
      %c0_99 = arith.constant 0 : index
      %196 = vector.load %arg20[%c0_97, %c0_98, %c0_99] : memref<4x8x8xf32, #tpu.memory_space<vmem>>, vector<4x8x8xf32>
      %197 = vector.broadcast %186 : vector<4x8x1xf32> to vector<4x8x8xf32>
      %198 = arith.mulf %197, %196 : vector<4x8x8xf32>
      %199 = arith.truncf %189 : vector<4x8x8xf32> to vector<4x8x8xbf16>
      "tpu.trace_start"() <{level = 10 : i32, message = "hqk,hkd->hqd"}> : () -> ()
      %cst_100 = arith.constant dense<0.000000e+00> : vector<4x8x8xf32>
      %200 = tpu.matmul %199, %167, %cst_100 {dimension_numbers = #tpu.dot_dimension_numbers<[2], [1], [1], [2], [0, 0, 0, 1, 1, 2], [0], [0]>} : vector<4x8x8xbf16>, vector<4x8x8xbf16>, vector<4x8x8xf32> -> vector<4x8x8xf32>
      "tpu.trace_stop"() : () -> ()
      %201 = arith.addf %198, %200 : vector<4x8x8xf32>
      %c0_101 = arith.constant 0 : index
      %c0_102 = arith.constant 0 : index
      %c0_103 = arith.constant 0 : index
      %202 = vector.load %arg20[%c0_101, %c0_102, %c0_103] : memref<4x8x8xf32, #tpu.memory_space<vmem>>, vector<4x8x8xf32>
      tpu.vector_store %arg20[%c0_101, %c0_102, %c0_103], %201 {strides = array<i32>} : memref<4x8x8xf32, #tpu.memory_space<vmem>>, vector<4x8x8xf32>,
      %c0_104 = arith.constant 0 : index
      %c0_105 = arith.constant 0 : index
      %c0_106 = arith.constant 0 : index
      %203 = vector.load %arg18[%c0_104, %c0_105, %c0_106] : memref<4x8x1xf32, #tpu.memory_space<vmem>>, vector<4x8x1xf32>
      tpu.vector_store %arg18[%c0_104, %c0_105, %c0_106], %183 {strides = array<i32>} : memref<4x8x1xf32, #tpu.memory_space<vmem>>, vector<4x8x1xf32>,
    }
    %c0_38 = arith.constant 0 : index
    %c0_39 = arith.constant 0 : index
    %c0_40 = arith.constant 0 : index
    %86 = vector.load %arg20[%c0_38, %c0_39, %c0_40] : memref<4x8x8xf32, #tpu.memory_space<vmem>>, vector<4x8x8xf32>
    %c0_41 = arith.constant 0 : index
    %c0_42 = arith.constant 0 : index
    %c0_43 = arith.constant 0 : index
    %87 = vector.load %arg19[%c0_41, %c0_42, %c0_43] : memref<4x8x1xf32, #tpu.memory_space<vmem>>, vector<4x8x1xf32>
    %88 = tpu.reciprocal %87 {approx = true} : vector<4x8x1xf32> -> vector<4x8x1xf32>
    %89 = vector.broadcast %88 : vector<4x8x1xf32> to vector<4x8x8xf32>
    %90 = arith.mulf %86, %89 : vector<4x8x8xf32>
    %91 = vector.extract_strided_slice %90 {offsets = [0, 0, 0], sizes = [1, 8, 8], strides = [1, 1, 1]} : vector<4x8x8xf32> to vector<1x8x8xf32>
    %92 = vector.shape_cast %91 : vector<1x8x8xf32> to vector<8x8xf32>
    %93 = vector.extract_strided_slice %90 {offsets = [1, 0, 0], sizes = [1, 8, 8], strides = [1, 1, 1]} : vector<4x8x8xf32> to vector<1x8x8xf32>
    %94 = vector.shape_cast %93 : vector<1x8x8xf32> to vector<8x8xf32>
    %95 = vector.extract_strided_slice %90 {offsets = [2, 0, 0], sizes = [1, 8, 8], strides = [1, 1, 1]} : vector<4x8x8xf32> to vector<1x8x8xf32>
    %96 = vector.shape_cast %95 : vector<1x8x8xf32> to vector<8x8xf32>
    %97 = vector.extract_strided_slice %90 {offsets = [3, 0, 0], sizes = [1, 8, 8], strides = [1, 1, 1]} : vector<4x8x8xf32> to vector<1x8x8xf32>
    %98 = vector.shape_cast %97 : vector<1x8x8xf32> to vector<8x8xf32>
    %99 = tpu.concatenate %92, %94, %96, %98 in 1 : vector<8x8xf32>, vector<8x8xf32>, vector<8x8xf32>, vector<8x8xf32> -> vector<8x32xf32>
    %100 = arith.truncf %99 : vector<8x32xf32> to vector<8x32xbf16>
    %c0_44 = arith.constant 0 : index
    %c0_45 = arith.constant 0 : index
    %101 = vector.load %arg7[%c0_44, %c0_45] : memref<32x32xbf16, #tpu.memory_space<vmem>>, vector<32x32xbf16>
    %cst_46 = arith.constant dense<0.000000e+00> : vector<8x32xf32>
    %102 = tpu.matmul %100, %101, %cst_46 {dimension_numbers = #tpu.dot_dimension_numbers<[1], [0], [0], [1], [0, 0, 1, 1], [], []>} : vector<8x32xbf16>, vector<32x32xbf16>, vector<8x32xf32> -> vector<8x32xf32>
    %c0_47 = arith.constant 0 : index
    %c0_48 = arith.constant 0 : index
    %103 = vector.load %arg8[%c0_47, %c0_48] : memref<1x32xf32, #tpu.memory_space<vmem>>, vector<1x32xf32>
    %104 = vector.broadcast %103 : vector<1x32xf32> to vector<8x32xf32>
    %105 = arith.addf %102, %104 : vector<8x32xf32>
    %106 = arith.addf %3, %105 : vector<8x32xf32>
    %c0_49 = arith.constant 0 : index
    %c0_50 = arith.constant 0 : index
    %107 = vector.load %arg9[%c0_49, %c0_50] : memref<1x32xf32, #tpu.memory_space<vmem>>, vector<1x32xf32>
    %c0_51 = arith.constant 0 : index
    %c0_52 = arith.constant 0 : index
    %108 = vector.load %arg10[%c0_51, %c0_52] : memref<1x32xf32, #tpu.memory_space<vmem>>, vector<1x32xf32>
    %cst_53 = arith.constant dense<0.000000e+00> : vector<8xf32>
    %109 = vector.multi_reduction <add>, %106, %cst_53 [1] : vector<8x32xf32> to vector<8xf32>
    %110 = vector.shape_cast %109 : vector<8xf32> to vector<8x1xf32>
    %cst_54 = arith.constant 3.200000e+01 : f32
    %111 = vector.broadcast %cst_54 : f32 to vector<8x1xf32>
    %112 = arith.divf %110, %111 : vector<8x1xf32>
    %113 = vector.broadcast %112 : vector<8x1xf32> to vector<8x32xf32>
    %114 = arith.subf %106, %113 : vector<8x32xf32>
    %115 = arith.mulf %114, %114 : vector<8x32xf32>
    %cst_55 = arith.constant dense<0.000000e+00> : vector<8xf32>
    %116 = vector.multi_reduction <add>, %115, %cst_55 [1] : vector<8x32xf32> to vector<8xf32>
    %117 = vector.shape_cast %116 : vector<8xf32> to vector<8x1xf32>
    %cst_56 = arith.constant 3.200000e+01 : f32
    %118 = vector.broadcast %cst_56 : f32 to vector<8x1xf32>
    %119 = arith.divf %117, %118 : vector<8x1xf32>
    %120 = vector.broadcast %112 : vector<8x1xf32> to vector<8x32xf32>
    %121 = arith.subf %106, %120 : vector<8x32xf32>
    %cst_57 = arith.constant 9.99999974E-6 : f32
    %122 = vector.broadcast %cst_57 : f32 to vector<8x1xf32>
    %123 = arith.addf %119, %122 : vector<8x1xf32>
    %124 = math.rsqrt %123 : vector<8x1xf32>
    %125 = vector.broadcast %124 : vector<8x1xf32> to vector<8x32xf32>
    %126 = arith.mulf %121, %125 : vector<8x32xf32>
    %127 = vector.broadcast %107 : vector<1x32xf32> to vector<8x32xf32>
    %128 = arith.mulf %126, %127 : vector<8x32xf32>
    %129 = vector.broadcast %108 : vector<1x32xf32> to vector<8x32xf32>
    %130 = arith.addf %128, %129 : vector<8x32xf32>
    %131 = arith.truncf %130 : vector<8x32xf32> to vector<8x32xbf16>
    %c0_58 = arith.constant 0 : index
    %c0_59 = arith.constant 0 : index
    %132 = vector.load %arg11[%c0_58, %c0_59] : memref<32x128xbf16, #tpu.memory_space<vmem>>, vector<32x128xbf16>
    %cst_60 = arith.constant dense<0.000000e+00> : vector<8x128xf32>
    %133 = tpu.matmul %131, %132, %cst_60 {dimension_numbers = #tpu.dot_dimension_numbers<[1], [0], [0], [1], [0, 0, 1, 1], [], []>} : vector<8x32xbf16>, vector<32x128xbf16>, vector<8x128xf32> -> vector<8x128xf32>
    %c0_61 = arith.constant 0 : index
    %c0_62 = arith.constant 0 : index
    %134 = vector.load %arg12[%c0_61, %c0_62] : memref<1x128xf32, #tpu.memory_space<vmem>>, vector<1x128xf32>
    %135 = vector.broadcast %134 : vector<1x128xf32> to vector<8x128xf32>
    %136 = arith.addf %133, %135 : vector<8x128xf32>
    %cst_63 = arith.constant 5.000000e-01 : f32
    %137 = vector.broadcast %cst_63 : f32 to vector<8x128xf32>
    %138 = arith.mulf %137, %136 : vector<8x128xf32>
    %cst_64 = arith.constant 4.471500e-02 : f32
    %139 = vector.broadcast %cst_64 : f32 to vector<8x128xf32>
    %140 = arith.mulf %139, %136 : vector<8x128xf32>
    %141 = arith.mulf %140, %136 : vector<8x128xf32>
    %142 = arith.mulf %141, %136 : vector<8x128xf32>
    %143 = arith.addf %136, %142 : vector<8x128xf32>
    %cst_65 = arith.constant 0.797884583 : f32
    %144 = vector.broadcast %cst_65 : f32 to vector<8x128xf32>
    %145 = arith.mulf %144, %143 : vector<8x128xf32>
    %146 = math.tanh %145 : vector<8x128xf32>
    %cst_66 = arith.constant 1.000000e+00 : f32
    %147 = vector.broadcast %cst_66 : f32 to vector<8x128xf32>
    %148 = arith.addf %147, %146 : vector<8x128xf32>
    %149 = arith.mulf %138, %148 : vector<8x128xf32>
    %150 = arith.truncf %149 : vector<8x128xf32> to vector<8x128xbf16>
    %c0_67 = arith.constant 0 : index
    %c0_68 = arith.constant 0 : index
    %151 = vector.load %arg13[%c0_67, %c0_68] : memref<128x32xbf16, #tpu.memory_space<vmem>>, vector<128x32xbf16>
    %cst_69 = arith.constant dense<0.000000e+00> : vector<8x32xf32>
    %152 = tpu.matmul %150, %151, %cst_69 {dimension_numbers = #tpu.dot_dimension_numbers<[1], [0], [0], [1], [0, 0, 1, 1], [], []>} : vector<8x128xbf16>, vector<128x32xbf16>, vector<8x32xf32> -> vector<8x32xf32>
    %c0_70 = arith.constant 0 : index
    %c0_71 = arith.constant 0 : index
    %153 = vector.load %arg14[%c0_70, %c0_71] : memref<1x32xf32, #tpu.memory_space<vmem>>, vector<1x32xf32>
    %154 = vector.broadcast %153 : vector<1x32xf32> to vector<8x32xf32>
    %155 = arith.addf %152, %154 : vector<8x32xf32>
    %156 = arith.addf %106, %155 : vector<8x32xf32>
    %c0_72 = arith.constant 0 : index
    %c0_73 = arith.constant 0 : index
    %c0_74 = arith.constant 0 : index
    %157 = vector.load %arg15[%c0_72, %c0_73, %c0_74] : memref<1x8x32xf32, #tpu.memory_space<vmem>>, vector<1x8x32xf32>
    %158 = vector.shape_cast %157 : vector<1x8x32xf32> to vector<8x32xf32>
    %159 = vector.shape_cast %156 : vector<8x32xf32> to vector<1x8x32xf32>
    tpu.vector_store %arg15[%c0_72, %c0_73, %c0_74], %159 {strides = array<i32>} : memref<1x8x32xf32, #tpu.memory_space<vmem>>, vector<1x8x32xf32>,
    return
  }
  func.func @transform_0(%arg0: i32, %arg1: i32) -> (i32, i32, i32) {
    %c0_i32 = arith.constant 0 : i32
    %c0_i32_0 = arith.constant 0 : i32
    return %arg0, %arg1, %c0_i32 : i32, i32, i32
  }
  func.func @transform_1(%arg0: i32, %arg1: i32) -> (i32, i32) {
    %c0_i32 = arith.constant 0 : i32
    %c0_i32_0 = arith.constant 0 : i32
    %c0_i32_1 = arith.constant 0 : i32
    return %c0_i32, %c0_i32_0 : i32, i32
  }
  func.func @transform_2(%arg0: i32, %arg1: i32) -> (i32, i32) {
    %c0_i32 = arith.constant 0 : i32
    %c0_i32_0 = arith.constant 0 : i32
    %c0_i32_1 = arith.constant 0 : i32
    return %c0_i32, %c0_i32_0 : i32, i32
  }
  func.func @transform_3(%arg0: i32, %arg1: i32) -> (i32, i32) {
    %c0_i32 = arith.constant 0 : i32
    %c0_i32_0 = arith.constant 0 : i32
    %c0_i32_1 = arith.constant 0 : i32
    return %c0_i32, %c0_i32_0 : i32, i32
  }
  func.func @transform_4(%arg0: i32, %arg1: i32) -> (i32, i32) {
    %c0_i32 = arith.constant 0 : i32
    %c0_i32_0 = arith.constant 0 : i32
    %c0_i32_1 = arith.constant 0 : i32
    return %c0_i32, %c0_i32_0 : i32, i32
  }
  func.func @transform_5(%arg0: i32, %arg1: i32) -> (i32, i32) {
    %c0_i32 = arith.constant 0 : i32
    %c0_i32_0 = arith.constant 0 : i32
    %c0_i32_1 = arith.constant 0 : i32
    return %c0_i32, %c0_i32_0 : i32, i32
  }
  func.func @transform_6(%arg0: i32, %arg1: i32) -> (i32, i32) {
    %c0_i32 = arith.constant 0 : i32
    %c0_i32_0 = arith.constant 0 : i32
    %c0_i32_1 = arith.constant 0 : i32
    return %c0_i32, %c0_i32_0 : i32, i32
  }
  func.func @transform_7(%arg0: i32, %arg1: i32) -> (i32, i32) {
    %c0_i32 = arith.constant 0 : i32
    %c0_i32_0 = arith.constant 0 : i32
    %c0_i32_1 = arith.constant 0 : i32
    return %c0_i32, %c0_i32_0 : i32, i32
  }
  func.func @transform_8(%arg0: i32, %arg1: i32) -> (i32, i32) {
    %c0_i32 = arith.constant 0 : i32
    %c0_i32_0 = arith.constant 0 : i32
    %c0_i32_1 = arith.constant 0 : i32
    return %c0_i32, %c0_i32_0 : i32, i32
  }
  func.func @transform_9(%arg0: i32, %arg1: i32) -> (i32, i32) {
    %c0_i32 = arith.constant 0 : i32
    %c0_i32_0 = arith.constant 0 : i32
    %c0_i32_1 = arith.constant 0 : i32
    return %c0_i32, %c0_i32_0 : i32, i32
  }
  func.func @transform_10(%arg0: i32, %arg1: i32) -> (i32, i32) {
    %c0_i32 = arith.constant 0 : i32
    %c0_i32_0 = arith.constant 0 : i32
    %c0_i32_1 = arith.constant 0 : i32
    return %c0_i32, %c0_i32_0 : i32, i32
  }
  func.func @transform_11(%arg0: i32, %arg1: i32) -> (i32, i32) {
    %c0_i32 = arith.constant 0 : i32
    %c0_i32_0 = arith.constant 0 : i32
    %c0_i32_1 = arith.constant 0 : i32
    return %c0_i32, %c0_i32_0 : i32, i32
  }
  func.func @transform_12(%arg0: i32, %arg1: i32) -> (i32, i32) {
    %c0_i32 = arith.constant 0 : i32
    %c0_i32_0 = arith.constant 0 : i32
    %c0_i32_1 = arith.constant 0 : i32
    return %c0_i32, %c0_i32_0 : i32, i32
  }
  func.func @transform_13(%arg0: i32, %arg1: i32) -> (i32, i32, i32) {
    %c0_i32 = arith.constant 0 : i32
    %c0_i32_0 = arith.constant 0 : i32
    return %arg0, %arg1, %c0_i32 : i32, i32, i32
  }
}

</mosaic_0001>

<bundles_post_ra>
// kernel: tpu_custom_call.1
= control target key start
LH: loop header
LB: loop body
LE: loop exit
PB: predicated region body
PF: predicated region fallthrough
CT: control target
= control target key end

     0   :  { %s2515_s0 = inlined_call_operand.vmem [shape: f32[2,8,32], index: 0, kind: input, shape index: {}]   ;;  %s2516_s1 = inlined_call_operand.vmem [shape: f32[1,32], index: 1, kind: input, shape index: {}]   ;;  %s2517_s2 = inlined_call_operand.vmem [shape: f32[1,32], index: 2, kind: input, shape index: {}]   ;;  %s2518_s3 = inlined_call_operand.vmem [shape: bf16[32,96], index: 3, kind: input, shape index: {}]   ;;  %s2519_s4 = inlined_call_operand.vmem [shape: f32[1,96], index: 4, kind: input, shape index: {}]   ;;  %s2520_s5 = inlined_call_operand.vmem [shape: bf16[32,32], index: 5, kind: input, shape index: {}]   ;;  %s2521_s6 = inlined_call_operand.vmem [shape: f32[1,32], index: 6, kind: input, shape index: {}]   ;;  %s2522_s7 = inlined_call_operand.vmem [shape: f32[1,32], index: 7, kind: input, shape index: {}]   ;;  %s2523_s8 = inlined_call_operand.vmem [shape: f32[1,32], index: 8, kind: input, shape index: {}]   ;;  %s2524_s9 = inlined_call_operand.vmem [shape: bf16[32,128], index: 9, kind: input, shape index: {}]   ;;  %s2525_s10 = inlined_call_operand.vmem [shape: f32[1,128], index: 10, kind: input, shape index: {}]   ;;  %s2526_s11 = inlined_call_operand.vmem [shape: bf16[128,32], index: 11, kind: input, shape index: {}]   ;;  %s2527_s12 = inlined_call_operand.vmem [shape: f32[1,32], index: 12, kind: input, shape index: {}]   ;;  %s2528_s13 = inlined_call_operand.hbm [shape: f32[2,8,32], index: 13, kind: output, shape index: {}]  }
   0x1   :  { %2530 = sst [smem:[#allocation10_spill]] %s2515_s0 }
   0x2   :  { %2531 = sst [smem:[#allocation11_spill]] %s2516_s1 }
   0x3   :  { %2532 = sst [smem:[#allocation12_spill]] %s2517_s2 }
   0x4   :  { %2533 = sst [smem:[#allocation13_spill]] %s2518_s3 }
   0x5   :  { %18 = vsyncpa [#allocation8], 0 }
   0x6   :  { %20 = vsyncpa [#allocation8 + $0x1], 0  ;;  %s2106_s25 = smov 0   ;;  %s2108_s26 = smov 0  }
   0x7   :  { %s2110_s27 = smov 0   ;;  %s2112_s28 = smov 0  }
   0x8   :  { %s2114_s29 = smov 0   ;;  %s2116_s30 = smov 0  }
   0x9 LB: > { %s1627_s14 = sadd.s32 4294967295, %s2014_s30   ;;  %s1628_s15 = sadd.s32 4294967294, %s2014_s30   ;;  %s2014_s30 = sphi %s2116_s30, %s26_s30   ;;  %s2010_s29 = sphi %s2114_s29, %s2549_s29   ;;  %s2006_s28 = sphi %s2112_s28, %s2548_s28   ;;  %s2002_s27 = sphi %s2110_s27, %s2547_s27   ;;  %s1998_s26 = sphi %s2108_s26, %s2546_s26   ;;  %s1994_s25 = sphi %s2106_s25, %s2545_s25  }
   0xa   : > { %s38_s16 = sadd.s32 1, %s2010_s29  ;;  %s327_s17 = sadd.s32 1, %s2002_s27 }
   0xb   : > { %p40_p0 = scmp.ge.s32.totalorder %s38_s16, 2  ;;  %p337_p1 = scmp.ne.s32.totalorder %s2002_s27, %s1998_s26 }
   0xc   : > { %p338_p2 = scmp.eq.s32.totalorder %s1627_s14, 1  ;;  %p343_p3 = scmp.ne.s32.totalorder %s1998_s26, %s1994_s25 }
   0xd   : > { %s2551_s16 = smov (%p40_p0, %s38_s16), 0  ;;  %p344_p5 = scmp.eq.s32.totalorder %s1628_s15, 1 }
   0xe   : > { %p2146_p4 = por %p338_p2, %p337_p1  ;;  %s322_s19 = ssub.s32 %s2010_s29, %s2551_s16 }
   0xf   : > { %p1631_p6 = scmp.ge.s32.totalorder %s2014_s30, 1  ;;  %p325_p7 = scmp.eq.s32.totalorder %s322_s19, 0 }
  0x10   : > { %p2153_p8 = por %p344_p5, %p343_p3  ;;  %p408_p9 = scmp.lt.s32.totalorder %s2014_s30, 3 }
  0x11   : > { %s2159_s21 = scalar_select %p325_p7, %s2002_s27, %s327_s17  }
  0x12   : > { %p409_p10 = pnand %p1631_p6, %p408_p9 }
  0x13   : > { %p454_p11 = scmp.lt.s32.totalorder (!%p409_p10), %s2006_s28, 1  ;;  %s2536_s0 = sld [smem:[#allocation10_spill]] (!%p409_p10) }
  0x14   : > { %412 = sbr.rel (%p409_p10) target bundleno = 2685 (0xa7d), region = 72  ;;  %s2529_s17 = sand.u32 (!%p409_p10), 1, %s1998_s26  }
  0x15   : > { %s2175_s19 = sshll.u32 (!%p409_p10), %s2529_s17, 3  ;;  %s2537_s3 = sld [smem:[#allocation13_spill]] (!%p409_p10) }
  0x16   : > { %s2538_s1 = sld [smem:[#allocation11_spill]] (!%p409_p10)  ;;  %s2025_s17 = smov (!%p409_p10), 112  }
  0x17   : > { %s2539_s2 = sld [smem:[#allocation12_spill]] (!%p409_p10)  ;;  %s2246_s24 = smov (!%p409_p10), 0  }
  0x19   : > { %s455_s22 = scalar_select %p454_p11, %s2006_s28, 1  ;;  %vm466_vm0 = vcmask 261120   ;;  %vm627_vm1 = vcmask 7168   ;;  %vm636_vm2 = vcmask 64512   ;;  %v2020_v7 = vmov 0.0  }
  0x1a   : > { %1716 = vmatprep.subr.bf16.mxu0 %v2020_v7  ;;  %v2021_v8 = vmov -1e+30   ;;  %632 = vst.msk [vmem:[#allocation5] sm:$0xff] %vm627_vm1, %v2020_v7  ;;  %633 = vst.msk [vmem:[#allocation5 + $0x8] sm:$0xff] %vm627_vm1, %v2020_v7  ;;  %vm2022_vm3 = vmmov 0   ;;  %v641_v31 = vlaneseq  ;;  %vm604_vm4 = vcmask 60416  }
  0x1b   : > { %s1633_s23 = sshll.u32 %s455_s22, 3  ;;  %628 = vst.msk [vmem:[#allocation4] sm:$0xff] %vm627_vm1, %v2021_v8  ;;  %629 = vst.msk [vmem:[#allocation4 + $0x8] sm:$0xff] %vm627_vm1, %v2021_v8  ;;  %v1886_v9 = vld [vmem:[%s2537_s3 + $0x8] sm:$0xff]   ;;  %1720 = vmatprep.mubr.msk.bf16.mxu0 %vm2022_vm3, %v2020_v7  ;;  %v1887_v10 = vld [vmem:[%s2537_s3] sm:$0xff]   ;;  %s2026_s22 = smov 96  }
  0x1c   : > { %s460_s15 = scalar_lea.vmem %s2536_s0, %s1633_s23  ;;  %630 = vst.msk [vmem:[#allocation4 + $0x10] sm:$0xff] %vm627_vm1, %v2021_v8  ;;  %631 = vst.msk [vmem:[#allocation4 + $0x18] sm:$0xff] %vm627_vm1, %v2021_v8  ;;  %1717 = vmatpush3.bf16.msra.mxu0 %v1886_v9  ;;  %v1634_v15 = vld [vmem:[%s2538_s1] ss:$0 sm:$0xff]  ;;  %s2023_s0 = smov 104   ;;  %v2226_v34 = vshrl.u32 %v641_v31, 7 }
  0x1d   : > { %v2166_v0 = vld [vmem:[%s460_s15] sm:$0xff]  ;;  %634 = vst.msk [vmem:[#allocation5 + $0x10] sm:$0xff] %vm627_vm1, %v2020_v7  ;;  %635 = vst.msk [vmem:[#allocation5 + $0x18] sm:$0xff] %vm627_vm1, %v2020_v7  ;;  %1718 = vmatprep.subr.bf16.mxu0 %v2020_v7  ;;  %s2024_s15 = smov 120   ;;  %s2027_s23 = smov 64   ;;  %v2228_v35 = vand.u32 127, %v641_v31 }
  0x1e   : > { %v467_v1 = vsel %vm466_vm0, %v2166_v0, 0.0  ;;  %637 = vst.msk [vmem:[#allocation6] sm:$0xff] %vm636_vm2, %v2020_v7  ;;  %638 = vst.msk [vmem:[#allocation6 + $0x8] sm:$0xff] %vm636_vm2, %v2020_v7  ;;  %v1635_v17 = vld [vmem:[%s2539_s2] ss:$0 sm:$0xff] }
  0x1f   : > { %468 = vadd.xlane.f32.xlu0 %v467_v1  ;;  %639 = vst.msk [vmem:[#allocation6 + $0x10] sm:$0xff] %vm636_vm2, %v2020_v7  ;;  %640 = vst.msk [vmem:[#allocation6 + $0x18] sm:$0xff] %vm636_vm2, %v2020_v7  ;;  %v1636_v21 = vld [vmem:[%s2519_s4] ss:$0 sm:$0xff] }
  0x20   : > { %1719 = vmatpush3.bf16.msra.mxu0 %v1887_v10 }
  0xa8   : > { %v469_v2 = vpop.xlane.xlu0 %468 }
  0xa9   : > { %v471_v3 = vmul.f32 0.03125, %v469_v2 }
  0xab   : > { %v472_v4 = vsub.f32 %v2166_v0, %v471_v3 }
  0xad   : > { %v473_v5 = vmul.f32 %v472_v4, %v472_v4 }
  0xaf   : > { %v474_v6 = vsel %vm466_vm0, %v473_v5, 0.0 }
  0xb0   : > { %475 = vadd.xlane.f32.xlu0 %v474_v6 }
 0x139   : > { %v476_v11 = vpop.xlane.xlu0 %475 }
 0x13a   : > { %v477_v12 = vmul.f32 0.03125, %v476_v11 }
 0x13c   : > { %v478_v13 = vadd.f32 1e-05, %v477_v12 }
 0x13e   : > { %1888 = vrsqrt.f32 %v478_v13 }
 0x14b   : > { %v1889_v14 = vpop.eup %1888 }
 0x14c   : > { %v480_v16 = vmul.f32 %v1889_v14, %v472_v4 }
 0x14e   : > { %v487_v18 = vmul.f32 %v1634_v15, %v480_v16 }
 0x150   : > { %v494_v19 = vadd.f32 %v1635_v17, %v487_v18 }
 0x152   : > { %v495_v20 = vpack.c.bf16 %v494_v19, %v494_v19 }
 0x154   : > { %1721 = vmatmul.mubr.msk.bf16.vlgmr.msra.gmra.mxu0 %vm466_vm0, %v495_v20 }
 0x214   : > { %v556_v22 = vpop.f32.mrf.mxu0 }
 0x215   : > { %v557_v23 = vadd.f32 %v1636_v21, %v556_v22 }
 0x216   : > { %v1722_v24 = vpop.f32.mrf.mxu0 }
 0x217   : > { %569 = vrot.lane.b32.xlu0 %v557_v23, %s2023_s0  ;;  %563 = vrot.lane.b32.xlu1 %v557_v23, %s2024_s15  ;;  %v2217_v27 = vpack.c.bf16 %v557_v23, %v557_v23 }
 0x218   : > { %v559_v25 = vpop.f32.mrf.mxu0 }
 0x21a   : > { %v1723_v26 = vpop.f32.mrf.mxu0 }
 0x21b   : > { %566 = vrot.lane.b32.xlu1 %v557_v23, %s2025_s17 }
 0x21f   : > { %588 = vrot.lane.b32.xlu1 %v2217_v27, %s2026_s22 }
 0x223   : > { %609 = vrot.lane.b32.xlu1 %v2217_v27, %s2027_s23 }
 0x289   : > { %v564_v28 = vpop.permute.xlu1 %563  ;;  %v570_v33 = vpop.permute.xlu0 %569 }
 0x28a   : > { %v2221_v29 = vpack.c.bf16 %v564_v28, %v564_v28  ;;  %v2232_v37 = vpack.c.bf16 %v570_v33, %v570_v33 }
 0x28c   : > { %590 = vrot.lane.b32.xlu1 %v2221_v29, %s2026_s22 }
 0x28d   : > { %v567_v30 = vpop.permute.xlu1 %566 }
 0x28e   : > { %v2224_v32 = vpack.c.bf16 %v567_v30, %v567_v30 }
 0x290   : > { %613 = vrot.lane.b32.xlu0 %v2224_v32, %s2027_s23  ;;  %592 = vrot.lane.b32.xlu1 %v2224_v32, %s2026_s22 }
 0x291   : > { %v589_v36 = vpop.permute.xlu1 %588 }
 0x292   : > { %605 = vst.msk [vmem:[#allocation2] sm:$0xf] %vm604_vm4, %v589_v36 }
 0x294   : > { %594 = vrot.lane.b32.xlu1 %v2232_v37, %s2026_s22 }
 0x295   : > { %v610_v38 = vpop.permute.xlu1 %609 }
 0x296   : > { %623 = vst.msk [vmem:[#allocation3] sm:$0xf] %vm604_vm4, %v610_v38 }
 0x298   : > { %611 = vrot.lane.b32.xlu1 %v2221_v29, %s2027_s23 }
 0x29c   : > { %615 = vrot.lane.b32.xlu1 %v2232_v37, %s2027_s23 }
 0x2fe   : > { %v591_v39 = vpop.permute.xlu1 %590 }
 0x2ff   : > { %606 = vst.msk [vmem:[#allocation2 + $0x4] sm:$0xf] %vm604_vm4, %v591_v39 }
 0x302   : > { %v614_v40 = vpop.permute.xlu0 %613  ;;  %v593_v41 = vpop.permute.xlu1 %592 }
 0x303   : > { %625 = vst.msk [vmem:[#allocation3 + $0x8] sm:$0xf] %vm604_vm4, %v614_v40  ;;  %607 = vst.msk [vmem:[#allocation2 + $0x8] sm:$0xf] %vm604_vm4, %v593_v41 }
 0x306   : > { %v595_v42 = vpop.permute.xlu1 %594 }
 0x307   : > { %608 = vst.msk [vmem:[#allocation2 + $0xc] sm:$0xf] %vm604_vm4, %v595_v42 }
 0x30a   : > { %v612_v43 = vpop.permute.xlu1 %611 }
 0x30b   : > { %624 = vst.msk [vmem:[#allocation3 + $0x4] sm:$0xf] %vm604_vm4, %v612_v43 }
 0x30e   : > { %v616_v44 = vpop.permute.xlu1 %615 }
 0x30f   : > { %626 = vst.msk [vmem:[#allocation3 + $0xc] sm:$0xf] %vm604_vm4, %v616_v44 }
 0x310 LB: >> { %v2028_v45 = vmov 0.0   ;;  %s1644_s14 = sshll.u32 %s2018_s24, 3  ;;  %vm2029_vm5 = vmmov 0   ;;  %p855_p12 = scmp.lt.s32.totalorder %s2018_s24, 0  ;;  %vm856_vm6 = vcmp.ge.s32.totalorder %v2226_v34, %v2228_v35  ;;  %v2030_v22 = vmov 0   ;;  %v867_v23 = vld [vmem:[#allocation4] sm:$0xff]  ;;  %s2018_s24 = sphi %s2246_s24, %s649_s24  }
 0x311   : >> { %1724 = vmatprep.subr.bf16.mxu0 %v2028_v45  ;;  %1730 = vmatprep.subr.bf16.mxu1 %v2028_v45  ;;  %s2258_s15 = sshra.s32 %s1644_s14, 3  ;;  %v2318_v26 = vld [vmem:[#allocation4 + $0x8] sm:$0xff]  ;;  %v869_v36 = vld [vmem:[#allocation4 + $0x10] sm:$0xff]  ;;  %v2329_v41 = vld [vmem:[#allocation4 + $0x18] sm:$0xff]  ;;  %vm994_vm9 = vcmask 1043456   ;;  %s649_s24 = sadd.s32 1, %s2018_s24  }
 0x312   : >> { %1726 = vmatprep.mubr.msk.bf16.mxu0 %vm2029_vm5, %v2028_v45  ;;  %1732 = vmatprep.mubr.msk.bf16.mxu1 %vm2029_vm5, %v2028_v45  ;;  %s1645_s17 = sshll.u32 %s2258_s15, 2  ;;  %p648_p13 = scmp.ge.s32.totalorder %s649_s24, 1 }
 0x313   : >> { %s656_s22 = scalar_lea.vmem [#allocation2], %s1645_s17  ;;  %1890 = vset.pattern.permute.xlu0 %v2030_v22  ;;  %1891 = vset.pattern.permute.xlu1 %v2030_v22  ;;  %s662_s14 = scalar_lea.vmem [#allocation3], %s1645_s17  ;;  %v1910_v35 = vld [vmem:[%s2520_s5 + $0x8] sm:$0xff] (%p648_p13)   ;;  %vm1237_vm10 = vcmask (%p648_p13), 130048   ;;  %vm1239_vm11 = vcmask (%p648_p13), 195584  }
 0x314   : >> { %v657_v46 = vld [vmem:[%s656_s22] sm:$0xf]  ;;  %v658_v47 = vld [vmem:[%s656_s22 + $0x4] sm:$0xf]  ;;  %v659_v50 = vld [vmem:[%s656_s22 + $0x8] sm:$0xf] }
 0x315   : >> { %v671_v48 = vsel %vm636_vm2, %v657_v46, 0  ;;  %v717_v49 = vsel %vm636_vm2, %v658_v47, 0  ;;  %v660_v51 = vld [vmem:[%s656_s22 + $0xc] sm:$0xf]  ;;  %v763_v52 = vsel %vm636_vm2, %v659_v50, 0  ;;  %s2034_s24 = smov (%p648_p13), 24  }
 0x316   : >> { %1725 = vmatpush3.bf16.xpose.msra.mxu0 %v671_v48  ;;  %1731 = vmatpush3.bf16.xpose.msra.mxu1 %v717_v49  ;;  %v809_v53 = vsel %vm636_vm2, %v660_v51, 0  ;;  %s857_s23 = scalar_select %p855_p12, 1, 0  ;;  %v663_v46 = vld [vmem:[%s662_s14] sm:$0xf] }
 0x317   : >> { %1736 = vmatprep.subr.bf16.mxu0 %v2028_v45  ;;  %1742 = vmatprep.subr.bf16.mxu1 %v2028_v45  ;;  %v996_v48 = vsel %vm994_vm9, %v663_v46, 0  ;;  %v664_v49 = vld [vmem:[%s662_s14 + $0x4] sm:$0xf]  ;;  %s1675_s17 = sshll.u32 (%p648_p13), %s2006_s28, 7  ;;  %s2542_s1 = scalar_lea.vmem (%p648_p13), [#allocation7], %s2175_s19 }
 0x318   : >> { %v858_v54 = vstv %s857_s23  ;;  %v1042_v50 = vsel %vm994_vm9, %v664_v49, 0  ;;  %s2032_s23 = smov (%p648_p13), 8   ;;  %s1543_s22 = sshll.u32 (%p648_p13), %s2542_s1, 4  ;;  %s2466_s22 = int_to_ptr.vmem [resolvable:$true] %s1543_s22 }
 0x319   : >> { %vm859_vm7 = vcmp.eq.s32.totalorder %v858_v54, 1  ;;  %v666_v54 = vld [vmem:[%s662_s14 + $0xc] sm:$0xf]  ;;  %s2543_s0 = smov (%p648_p13), %s2542_s1  ;;  %s2544_s28 = sand.u32 (%p648_p13), 1, %s1998_s26  }
 0x31a   : >> { %vm2290_vm8 = vmor %vm859_vm7, %vm856_vm6  ;;  %s1529_s15 = scalar_lea.sflag (%p648_p13), [#allocation8], %s2544_s28  ;;  %s1934_s1 = scalar_lea.vmem (%p648_p13), %s2466_s22, 128 }
 0x31b   : > { %p1935_p0 = scmp.ne.s32.totalorder (%p648_p13), %s2466_s22, %s1934_s1 }
 0x31d   : >> { %1727 = vmatmul.mubr.msk.bf16.vlgmr.msra.gmra.mxu0 %vm636_vm2, %v2217_v27  ;;  %1733 = vmatmul.mubr.msk.bf16.vlgmr.msra.gmra.mxu1 %vm636_vm2, %v2221_v29  ;;  %p1936_p1 = pnand (%p648_p13), %p1935_p0, %p2146_p4 }
 0x31e   : >> { %1737 = vmatpush3.bf16.xpose.msra.mxu0 %v763_v52  ;;  %1743 = vmatpush3.bf16.xpose.msra.mxu1 %v809_v53  ;;  %v665_v52 = vld [vmem:[%s662_s14 + $0x8] sm:$0xf]  ;;  %s2033_s14 = smov (%p648_p13), 16  }
 0x31f   : >> { %1738 = vmatprep.mubr.msk.bf16.mxu0 %vm2029_vm5, %v2028_v45  ;;  %1744 = vmatprep.mubr.msk.bf16.mxu1 %vm2029_vm5, %v2028_v45  ;;  %v1088_v53 = vsel %vm994_vm9, %v665_v52, 0  ;;  %p1937_p2 = pneg (%p648_p13), %p1936_p1 }
 0x320   : >> { %1748 = vmatprep.subr.bf16.mxu0 %v2028_v45  ;;  %1754 = vmatprep.subr.bf16.mxu1 %v2028_v45 }
 0x325   : >> { %1739 = vmatmul.mubr.msk.bf16.vlgmr.msra.gmra.mxu0 %vm636_vm2, %v2224_v32  ;;  %1745 = vmatmul.mubr.msk.bf16.vlgmr.msra.gmra.mxu1 %vm636_vm2, %v2232_v37  ;;  %v1911_v37 = vld [vmem:[%s2520_s5] sm:$0xff] (%p648_p13)  }
 0x326   : >> { %1750 = vmatprep.mubr.msk.bf16.mxu0 %vm2029_vm5, %v2028_v45  ;;  %1756 = vmatprep.mubr.msk.bf16.mxu1 %vm2029_vm5, %v2028_v45 }
 0x327   : >> { %1749 = vmatpush3.bf16.msra.mxu0 %v996_v48  ;;  %1755 = vmatpush3.bf16.msra.mxu1 %v1042_v50 }
 0x328   : >> { %1760 = vmatprep.subr.bf16.mxu0 %v2028_v45  ;;  %1766 = vmatprep.subr.bf16.mxu1 %v2028_v45 }
 0x3dd   : >> { %v707_v55 = vpop.f32.mrf.mxu0  ;;  %v753_v56 = vpop.f32.mrf.mxu1 }
 0x3de   : >> { %v851_v58 = vmul.f32 0.35355338, %v707_v55  ;;  %v852_v59 = vmul.f32 0.35355338, %v753_v56  ;;  %v1134_v55 = vsel %vm994_vm9, %v666_v54, 0 }
 0x3df   : >> { %v1728_v60 = vpop.f32.mrf.mxu0  ;;  %v1734_v61 = vpop.f32.mrf.mxu1 }
 0x3e0   : >> { %v2296_v62 = vsel %vm2290_vm8, %v851_v58, -1e+30  ;;  %v2300_v63 = vsel %vm2290_vm8, %v852_v59, -1e+30 }
 0x3e1   : >> { %v710_v1 = vpop.f32.mrf.mxu0  ;;  %v756_v2 = vpop.f32.mrf.mxu1  ;;  %v871_v3 = vsel %vm636_vm2, %v2296_v62, -inf  ;;  %v874_v6 = vsel %vm636_vm2, %v2300_v63, -inf }
 0x3e2   : >> { %872 = vmax.xlane.f32.xlu0 %v871_v3 }
 0x3e3   : >> { %v1729_v4 = vpop.f32.mrf.mxu0  ;;  %v1735_v5 = vpop.f32.mrf.mxu1 }
 0x3e5   : >> { %v799_v8 = vpop.f32.mrf.mxu0  ;;  %v845_v9 = vpop.f32.mrf.mxu1 }
 0x3e6   : >> { %v853_v10 = vmul.f32 0.35355338, %v799_v8  ;;  %v854_v11 = vmul.f32 0.35355338, %v845_v9  ;;  %875 = vmax.xlane.f32.xlu0 %v874_v6 }
 0x3e7   : >> { %v1740_v12 = vpop.f32.mrf.mxu0  ;;  %v1746_v13 = vpop.f32.mrf.mxu1 }
 0x3e8   : >> { %v2308_v14 = vsel %vm2290_vm8, %v853_v10, -1e+30  ;;  %v2312_v15 = vsel %vm2290_vm8, %v854_v11, -1e+30 }
 0x3e9   : >> { %v802_v16 = vpop.f32.mrf.mxu0  ;;  %v848_v17 = vpop.f32.mrf.mxu1  ;;  %v877_v18 = vsel %vm636_vm2, %v2308_v14, -inf  ;;  %v880_v21 = vsel %vm636_vm2, %v2312_v15, -inf }
 0x3ea   : >> { %878 = vmax.xlane.f32.xlu1 %v877_v18 }
 0x3eb   : >> { %v1741_v19 = vpop.f32.mrf.mxu0  ;;  %v1747_v20 = vpop.f32.mrf.mxu1 }
 0x3ee   : >> { %881 = vmax.xlane.f32.xlu1 %v880_v21 }
 0x46b   : >> { %v873_v24 = vpop.xlane.xlu0 %872 }
 0x46c   : >> { %v883_v25 = vmax.f32 %v867_v23, %v873_v24  ;;  %v931_v24 = vld [vmem:[#allocation5] sm:$0xff] }
 0x46e   : >> { %v887_v28 = vsub.f32 %v867_v23, %v883_v25  ;;  %1184 = vst.msk [vmem:[#allocation4] sm:$0xff] %vm627_vm1, %v883_v25  ;;  %901 = vperm.xlu0 %1890, %v883_v25  }
 0x46f   : >> { %v876_v30 = vpop.xlane.xlu0 %875 }
 0x470   : >> { %v891_v31 = vmul.f32 1.442695, %v887_v28  ;;  %v2322_v33 = vmax.f32 %v2318_v26, %v876_v30  ;;  %v932_v28 = vld [vmem:[#allocation5 + $0x8] sm:$0xff] }
 0x472   : >> { %1892 = vpow2.f32 %v891_v31  ;;  %v888_v38 = vsub.f32 %v2318_v26, %v2322_v33  ;;  %1185 = vst.msk [vmem:[#allocation4 + $0x8] sm:$0xff] %vm627_vm1, %v2322_v33  ;;  %906 = vperm.xlu1 %1891, %v2322_v33  }
 0x473   : >> { %v879_v39 = vpop.xlane.xlu1 %878 }
 0x474   : >> { %v885_v40 = vmax.f32 %v869_v36, %v879_v39  ;;  %v933_v39 = vld [vmem:[#allocation5 + $0x10] sm:$0xff] }
 0x476   : >> { %v889_v42 = vsub.f32 %v869_v36, %v885_v40  ;;  %1186 = vst.msk [vmem:[#allocation4 + $0x10] sm:$0xff] %vm627_vm1, %v885_v40  ;;  %911 = vperm.xlu1 %1891, %v885_v40   ;;  %v959_v40 = vld [vmem:[#allocation6] sm:$0xff] }
 0x477   : >> { %v882_v43 = vpop.xlane.xlu1 %881 }
 0x478   : >> { %v2333_v44 = vmax.f32 %v2329_v41, %v882_v43  ;;  %v895_v9 = vmul.f32 1.442695, %v889_v42  ;;  %v934_v43 = vld [vmem:[#allocation5 + $0x18] sm:$0xff] }
 0x47a   : >> { %v890_v47 = vsub.f32 %v2329_v41, %v2333_v44  ;;  %1187 = vst.msk [vmem:[#allocation4 + $0x18] sm:$0xff] %vm627_vm1, %v2333_v44  ;;  %916 = vperm.xlu1 %1891, %v2333_v44  }
 0x47f   : >> { %v1893_v51 = vpop.eup %1892 }
 0x480   : >> { %965 = vperm.xlu1 %1891, %v1893_v51   ;;  %v935_v25 = vmul.f32 %v1893_v51, %v931_v24 }
 0x4e9   : >> { %v902_v56 = vpop.permute.xlu0 %901 }
 0x4ea   : >> { %v919_v57 = vsub.f32 %v2296_v62, %v902_v56  ;;  %v961_v56 = vld [vmem:[#allocation6 + $0x10] sm:$0xff] }
 0x4ec   : >> { %v923_v58 = vmul.f32 1.442695, %v919_v57 }
 0x4ed   : >> { %v907_v59 = vpop.permute.xlu1 %906 }
 0x4ee   : >> { %1894 = vpow2.f32 %v923_v58  ;;  %v920_v60 = vsub.f32 %v2300_v63, %v907_v59 }
 0x4f0   : >> { %v925_v61 = vmul.f32 1.442695, %v920_v60 }
 0x4f1   : >> { %v912_v1 = vpop.permute.xlu1 %911 }
 0x4f2   : >> { %1896 = vpow2.f32 %v925_v61  ;;  %v921_v2 = vsub.f32 %v2308_v14, %v912_v1 }
 0x4f4   : >> { %v927_v3 = vmul.f32 1.442695, %v921_v2 }
 0x4f5   : >> { %v917_v4 = vpop.permute.xlu1 %916 }
 0x4f6   : >> { %1898 = vpow2.f32 %v927_v3  ;;  %v922_v5 = vsub.f32 %v2312_v15, %v917_v4  ;;  %v893_v15 = vmul.f32 1.442695, %v888_v38  ;;  %v962_v3 = vld [vmem:[#allocation6 + $0x18] sm:$0xff] }
 0x4f8   : >> { %v929_v6 = vmul.f32 1.442695, %v922_v5 }
 0x4fa   : >> { %1900 = vpow2.f32 %v929_v6 }
 0x4fb   : >> { %v1895_v8 = vpop.eup %1894  ;;  %1902 = vpow2.f32 %v895_v9  ;;  %v966_v23 = vpop.permute.xlu1 %965 }
 0x4fc   : >> { %v939_v62 = vsel %vm636_vm2, %v1895_v8, 0.0  ;;  %v987_v10 = vpack.c.bf16 %v1895_v8, %v1895_v8  ;;  %1904 = vpow2.f32 %v893_v15  ;;  %v983_v46 = vmul.f32 %v966_v23, %v959_v40 }
 0x4fd   : >> { %940 = vadd.xlane.f32.xlu1 %v939_v62 }
 0x4fe   : >> { %1751 = vmatmul.mubr.msk.bf16.vlgmr.msra.gmra.mxu0 %vm636_vm2, %v987_v10 }
 0x4ff   : >> { %v1897_v63 = vpop.eup %1896  ;;  %1761 = vmatpush3.bf16.msra.mxu0 %v1088_v53  ;;  %1762 = vmatprep.mubr.msk.bf16.mxu0 %vm2029_vm5, %v2028_v45 }
 0x500   : >> { %v942_v11 = vsel %vm636_vm2, %v1897_v63, 0.0  ;;  %v988_v12 = vpack.c.bf16 %v1897_v63, %v1897_v63  ;;  %1788 = vmatprep.subr.bf16.mxu0 (%p648_p13), %v2020_v7 }
 0x501   : >> { %943 = vadd.xlane.f32.xlu0 %v942_v11 }
 0x502   : >> { %1757 = vmatmul.mubr.msk.bf16.vlgmr.msra.gmra.mxu1 %vm636_vm2, %v988_v12 }
 0x503   : >> { %v1899_v13 = vpop.eup %1898  ;;  %1767 = vmatpush3.bf16.msra.mxu1 %v1134_v55  ;;  %1768 = vmatprep.mubr.msk.bf16.mxu1 %vm2029_vm5, %v2028_v45  ;;  %v897_v45 = vmul.f32 1.442695, %v890_v47  ;;  %v960_v47 = vld [vmem:[#allocation6 + $0x8] sm:$0xff] }
 0x504   : >> { %v989_v14 = vpack.c.bf16 %v1899_v13, %v1899_v13  ;;  %v945_v20 = vsel %vm636_vm2, %v1899_v13, 0.0  ;;  %1772 = vmatprep.subr.bf16.mxu1 (%p648_p13), %v2020_v7 }
 0x505   : >> { %1906 = vpow2.f32 %v897_v45 }
 0x506   : >> { %1763 = vmatmul.mubr.msk.bf16.vlgmr.msra.gmra.mxu0 %vm636_vm2, %v989_v14 }
 0x507   : >> { %v1901_v16 = vpop.eup %1900  ;;  %1804 = vmatprep.mubr.msk.bf16.mxu0 (%p648_p13), %vm2022_vm3, %v2020_v7 }
 0x508   : >> { %v990_v17 = vpack.c.bf16 %v1901_v16, %v1901_v16  ;;  %v1903_v18 = vpop.eup %1902  ;;  %v948_v21 = vsel %vm636_vm2, %v1901_v16, 0.0 }
 0x509   : >> { %v1905_v19 = vpop.eup %1904  ;;  %v937_v41 = vmul.f32 %v1903_v18, %v933_v39 }
 0x50a   : >> { %1769 = vmatmul.mubr.msk.bf16.vlgmr.msra.gmra.mxu1 %vm636_vm2, %v990_v17  ;;  %v936_v31 = vmul.f32 %v1905_v19, %v932_v28 }
 0x50b   : > { %1776 = vmatprep.mubr.msk.bf16.mxu1 (%p648_p13), %vm2022_vm3, %v2020_v7  ;;  %1773 = vmatpush3.bf16.msra.mxu1 (%p648_p13), %v1910_v35 }
 0x50c   : > { %1774 = vmatprep.subr.bf16.mxu1 (%p648_p13), %v2020_v7 }
 0x50e   : >> { %975 = vperm.xlu1 %1891, %v1903_v18  }
 0x50f   : > { %1775 = vmatpush3.bf16.msra.mxu1 (%p648_p13), %v1911_v37 }
 0x510   : > { %1780 = vmatprep.subr.bf16.mxu1 (%p648_p13), %v2020_v7 }
 0x512   : >> { %v1907_v22 = vpop.eup %1906 }
 0x513   : >> { %v938_v50 = vmul.f32 %v1907_v22, %v934_v43 }
 0x517   : >> { %970 = vperm.xlu0 %1890, %v1905_v19   ;;  %v2031_v19 = vmov (%p648_p13), 0  }
 0x51b   : > { %1908 = vset.pattern.permute.xlu0 (%p648_p13), %v2031_v19 }
 0x532   : >> { %946 = vadd.xlane.f32.xlu1 %v945_v20 }
 0x536   : >> { %949 = vadd.xlane.f32.xlu1 %v948_v21 }
 0x547   : >> { %980 = vperm.xlu1 %1891, %v1907_v22  }
 0x54b   : > { %1909 = vset.pattern.permute.xlu1 (%p648_p13), %v2031_v19 }
 0x586   : >> { %v941_v26 = vpop.xlane.xlu1 %940 }
 0x587   : >> { %v951_v30 = vadd.f32 %v941_v26, %v935_v25 }
 0x589   : >> { %955 = vst.msk [vmem:[#allocation5] sm:$0xff] %vm627_vm1, %v951_v30 }
 0x58a   : >> { %v944_v33 = vpop.xlane.xlu0 %943  ;;  %v976_v38 = vpop.permute.xlu1 %975 }
 0x58b   : >> { %v952_v36 = vadd.f32 %v944_v33, %v936_v31  ;;  %v985_v1 = vmul.f32 %v976_v38, %v961_v56 }
 0x58d   : >> { %956 = vst.msk [vmem:[#allocation5 + $0x8] sm:$0xff] %vm627_vm1, %v952_v36 }
 0x590   : > { %v1192_v20 = vld [vmem:[#allocation5] sm:$0xff] (%p648_p13) }
 0x592   : >> { %v971_v48 = vpop.permute.xlu0 %970 }
 0x593   : >> { %v984_v55 = vmul.f32 %v971_v48, %v960_v47 }
 0x594   : > { %v1193_v16 = vld [vmem:[#allocation5 + $0x8] sm:$0xff] (%p648_p13) }
 0x595   : > { %1922 = vrcp.f32 (%p648_p13), %v1193_v16  ;;  %v1661_v16 = vld [vmem:[%s2525_s10] ss:$0 sm:$0xff] (%p648_p13) }
 0x5a2   : > { %v1923_v27 = vpop.eup (%p648_p13), %1922 }
 0x5a3   : > { %1207 = vperm.xlu0 (%p648_p13), %1908, %v1923_v27  }
 0x5bb   : >> { %v947_v42 = vpop.xlane.xlu1 %946 }
 0x5bc   : >> { %v953_v44 = vadd.f32 %v947_v42, %v937_v41 }
 0x5be   : >> { %957 = vst.msk [vmem:[#allocation5 + $0x10] sm:$0xff] %vm627_vm1, %v953_v44  ;;  %v1032_v49 = vpop.f32.mrf.mxu0 }
 0x5bf   : >> { %v1176_v51 = vadd.f32 %v1032_v49, %v983_v46  ;;  %v950_v52 = vpop.xlane.xlu1 %949  ;;  %v1655_v46 = vld [vmem:[%s2521_s6] ss:$0 sm:$0xff] (%p648_p13) }
 0x5c0   : >> { %v954_v53 = vadd.f32 %v950_v52, %v938_v50  ;;  %v1752_v54 = vpop.f32.mrf.mxu0 }
 0x5c1   : >> { %1180 = vst.msk [vmem:[#allocation6] sm:$0xff] %vm636_vm2, %v1176_v51 }
 0x5c2   : >> { %958 = vst.msk [vmem:[#allocation5 + $0x18] sm:$0xff] %vm627_vm1, %v954_v53  ;;  %v1035_v57 = vpop.f32.mrf.mxu0  ;;  %v1078_v58 = vpop.f32.mrf.mxu1 }
 0x5c3   : >> { %v1177_v59 = vadd.f32 %v1078_v58, %v984_v55  ;;  %v981_v2 = vpop.permute.xlu1 %980 }
 0x5c4   : >> { %v1753_v60 = vpop.f32.mrf.mxu0  ;;  %v1758_v61 = vpop.f32.mrf.mxu1  ;;  %v986_v62 = vmul.f32 %v981_v2, %v962_v3  ;;  %v1659_v3 = vld [vmem:[%s2522_s7] ss:$0 sm:$0xff] (%p648_p13) }
 0x5c5   : >> { %1181 = vst.msk [vmem:[#allocation6 + $0x8] sm:$0xff] %vm636_vm2, %v1177_v59  ;;  %v1194_v18 = vld [vmem:[#allocation5 + $0x10] sm:$0xff] (%p648_p13)  ;;  %v1912_v59 = vld [vmem:[%s2524_s9 + $0x8] sm:$0xff] (%p648_p13)  }
 0x5c6   : >> { %v1081_v4 = vpop.f32.mrf.mxu1  ;;  %v1124_v5 = vpop.f32.mrf.mxu0 }
 0x5c7   : >> { %v1178_v6 = vadd.f32 %v1124_v5, %v985_v1  ;;  %v1660_v5 = vld [vmem:[%s2523_s8] ss:$0 sm:$0xff] (%p648_p13) }
 0x5c8   : >> { %v1759_v8 = vpop.f32.mrf.mxu1  ;;  %v1764_v9 = vpop.f32.mrf.mxu0  ;;  %v1188_v33 = vld [vmem:[#allocation6] sm:$0xff] (%p648_p13) }
 0x5c9   : >> { %1182 = vst.msk [vmem:[#allocation6 + $0x10] sm:$0xff] %vm636_vm2, %v1178_v6  ;;  %v1195_v17 = vld [vmem:[#allocation5 + $0x18] sm:$0xff] (%p648_p13) }
 0x5ca   : >> { %v1127_v10 = vpop.f32.mrf.mxu0  ;;  %v1170_v63 = vpop.f32.mrf.mxu1  ;;  %1924 = vrcp.f32 (%p648_p13), %v1195_v17 }
 0x5cb   : >> { %v1179_v11 = vadd.f32 %v1170_v63, %v986_v62  ;;  %1926 = vrcp.f32 (%p648_p13), %v1194_v18  ;;  %v1914_v62 = vld [vmem:[%s2526_s11 + $0x38] sm:$0xff] (%p648_p13)   ;;  %v1915_v10 = vld [vmem:[%s2526_s11 + $0x30] sm:$0xff] (%p648_p13)   ;;  %v1916_v63 = vld [vmem:[%s2526_s11 + $0x28] sm:$0xff] (%p648_p13)  }
 0x5cc   : >> { %v1765_v12 = vpop.f32.mrf.mxu0  ;;  %v1770_v13 = vpop.f32.mrf.mxu1  ;;  %651 = sbr.rel (!%p648_p13) target bundleno = 784 (0x310), region = 118  ;;  %1928 = vrcp.f32 (%p648_p13), %v1192_v20  ;;  %v1189_v45 = vld [vmem:[#allocation6 + $0x8] sm:$0xff] (%p648_p13)  ;;  %1789 = vmatpush3.bf16.msra.mxu0 (%p648_p13), %v1914_v62 }
 0x5cd   : >> { %1183 = vst.msk [vmem:[#allocation6 + $0x18] sm:$0xff] %vm636_vm2, %v1179_v11  ;;  %1790 = vmatprep.subr.bf16.mxu0 (%p648_p13), %v2020_v7  ;;  %v1917_v11 = vld [vmem:[%s2526_s11 + $0x20] sm:$0xff] (%p648_p13)   ;;  %v1918_v12 = vld [vmem:[%s2526_s11 + $0x18] sm:$0xff] (%p648_p13)   ;;  %v1919_v13 = vld [vmem:[%s2526_s11 + $0x10] sm:$0xff] (%p648_p13)  }
 0x5ce   : >> { %v1173_v14 = vpop.f32.mrf.mxu1 }
 0x5cf   : > { %v1920_v14 = vld [vmem:[%s2526_s11 + $0x8] sm:$0xff] (%p648_p13)  }
 0x5d0   : >> { %v1771_v15 = vpop.f32.mrf.mxu1  ;;  %v1190_v25 = vld [vmem:[#allocation6 + $0x10] sm:$0xff] (%p648_p13)  ;;  %1791 = vmatpush3.bf16.msra.mxu0 (%p648_p13), %v1915_v10 }
 0x5d1   : > { %1792 = vmatprep.subr.bf16.mxu0 %v2020_v7  ;;  %v1921_v15 = vld [vmem:[%s2526_s11] sm:$0xff]  }
 0x5d4   : > { %v1191_v22 = vld [vmem:[#allocation6 + $0x18] sm:$0xff]  ;;  %1793 = vmatpush3.bf16.msra.mxu0 %v1916_v63 }
 0x5d5   : > { %1794 = vmatprep.subr.bf16.mxu0 %v2020_v7 }
 0x5d7   : > { %v1925_v29 = vpop.eup %1924 }
 0x5d8   : > { %v1927_v32 = vpop.eup %1926  ;;  %1217 = vperm.xlu1 %1909, %v1925_v29   ;;  %1795 = vmatpush3.bf16.msra.mxu0 %v1917_v11 }
 0x5d9   : > { %v1929_v34 = vpop.eup %1928  ;;  %1212 = vperm.xlu0 %1908, %v1927_v32   ;;  %1796 = vmatprep.subr.bf16.mxu0 %v2020_v7 }
 0x5dc   : > { %1202 = vperm.xlu1 %1909, %v1929_v34   ;;  %1797 = vmatpush3.bf16.msra.mxu0 %v1918_v12 }
 0x5dd   : > { %1798 = vmatprep.subr.bf16.mxu0 %v2020_v7 }
 0x5e0   : > { %1799 = vmatpush3.bf16.msra.mxu0 %v1919_v13 }
 0x5e1   : > { %1800 = vmatprep.subr.bf16.mxu0 %v2020_v7 }
 0x5e4   : > { %1801 = vmatpush3.bf16.msra.mxu0 %v1920_v14 }
 0x5e5   : > { %1802 = vmatprep.subr.bf16.mxu0 %v2020_v7 }
 0x5e8   : > { %1803 = vmatpush3.bf16.msra.mxu0 %v1921_v15 }
 0x61e   : > { %v1208_v21 = vpop.permute.xlu0 %1207 }
 0x61f   : > { %v1221_v23 = vmul.f32 %v1208_v21, %v1189_v45 }
 0x621   : > { %1225 = vrot.lane.b32.xlu0 %v1221_v23, %s2032_s23  ;;  %s2035_s23 = smov [#allocation7]  }
 0x653   : > { %v1218_v24 = vpop.permute.xlu1 %1217 }
 0x654   : > { %v1223_v26 = vmul.f32 %v1218_v24, %v1191_v22  ;;  %v1213_v28 = vpop.permute.xlu0 %1212  ;;  %v1665_v24 = vld [vmem:[%s2527_s12] ss:$0 sm:$0xff] }
 0x655   : > { %v1222_v30 = vmul.f32 %v1213_v28, %v1190_v25 }
 0x656   : > { %1233 = vrot.lane.b32.xlu0 %v1223_v26, %s2034_s24  ;;  %s2464_s24 = scalar_lea.hbm %s2528_s13, %s1675_s17  ;;  %s1938_s17 = sshll.u32 %s2035_s23, 4  ;;  %s1939_s17 = int_to_ptr.vmem [resolvable:$false] %s1938_s17 }
 0x657   : > { %1229 = vrot.lane.b32.xlu1 %v1222_v30, %s2033_s14  ;;  %v1203_v31 = vpop.permute.xlu1 %1202  ;;  %s1940_s14 = scalar_lea.vmem %s1939_s17, 256  ;;  %p1941_p3 = scmp.lt.s32.totalorder %s2466_s22, %s1939_s17 }
 0x658   : > { %v1220_v38 = vmul.f32 %v1203_v31, %v1188_v33  ;;  %p1942_p5 = scmp.lt.s32.totalorder %s1940_s14, %s1934_s1 }
 0x65a   : > { %p1943_p6 = por %p1942_p5, %p1941_p3 }
 0x65c   : > { %p1944_p7 = pnand %p1943_p6, %p1937_p2 }
 0x693   : > { %v1226_v36 = vpop.permute.xlu0 %1225 }
 0x694   : > { %v1236_v39 = vsel %vm636_vm2, %v1220_v38, %v1226_v36 }
 0x6c8   : > { %v1234_v41 = vpop.permute.xlu0 %1233 }
 0x6c9   : > { %v1230_v40 = vpop.permute.xlu1 %1229 }
 0x6ca   : > { %v1238_v42 = vsel %vm1237_vm10, %v1236_v39, %v1230_v40 }
 0x6cb   : > { %v1240_v43 = vsel %vm1239_vm11, %v1238_v42, %v1234_v41 }
 0x6cc   : > { %v1241_v44 = vpack.c.bf16 %v1240_v43, %v1240_v43 }
 0x6ce   : > { %1777 = vmatmul.mubr.msk.bf16.vlgmr.msra.gmra.mxu1 %vm466_vm0, %v1241_v44 }
 0x6cf   : > { %1784 = vmatprep.mubr.msk.bf16.mxu1 %vm2022_vm3, %v2020_v7  ;;  %1781 = vmatpush3.bf16.msra.mxu1 %v1912_v59 }
 0x6d0   : > { %1782 = vmatprep.subr.bf16.mxu1 %v2020_v7 }
 0x78e   : > { %v1302_v47 = vpop.f32.mrf.mxu1 }
 0x78f   : > { %v1303_v48 = vadd.f32 %v1655_v46, %v1302_v47 }
 0x790   : > { %v1778_v49 = vpop.f32.mrf.mxu1 }
 0x791   : > { %v2400_v50 = vadd.f32 %v1303_v48, %v2166_v0  ;;  %v1913_v0 = vld [vmem:[%s2524_s9] sm:$0xff]  }
 0x792   : > { %v1305_v51 = vpop.f32.mrf.mxu1  ;;  %1783 = vmatpush3.bf16.msra.mxu1 %v1913_v0 }
 0x793   : > { %v1311_v52 = vsel %vm466_vm0, %v2400_v50, 0.0 }
 0x794   : > { %1312 = vadd.xlane.f32.xlu1 %v1311_v52  ;;  %v1779_v53 = vpop.f32.mrf.mxu1 }
 0x81d   : > { %v1313_v54 = vpop.xlane.xlu1 %1312 }
 0x81e   : > { %v1314_v55 = vmul.f32 0.03125, %v1313_v54 }
 0x820   : > { %v1315_v56 = vsub.f32 %v2400_v50, %v1314_v55 }
 0x822   : > { %v1316_v57 = vmul.f32 %v1315_v56, %v1315_v56 }
 0x824   : > { %v1317_v58 = vsel %vm466_vm0, %v1316_v57, 0.0 }
 0x825   : > { %1318 = vadd.xlane.f32.xlu0 %v1317_v58 }
 0x8ae   : > { %v1319_v60 = vpop.xlane.xlu0 %1318 }
 0x8af   : > { %v1320_v61 = vmul.f32 0.03125, %v1319_v60 }
 0x8b1   : > { %v1321_v1 = vadd.f32 1e-05, %v1320_v61 }
 0x8b3   : > { %1930 = vrsqrt.f32 %v1321_v1 }
 0x8c0   : > { %v1931_v2 = vpop.eup %1930 }
 0x8c1   : > { %v1323_v4 = vmul.f32 %v1931_v2, %v1315_v56 }
 0x8c3   : > { %v1330_v6 = vmul.f32 %v1659_v3, %v1323_v4 }
 0x8c5   : > { %v1337_v8 = vadd.f32 %v1660_v5, %v1330_v6 }
 0x8c7   : > { %v1338_v9 = vpack.c.bf16 %v1337_v8, %v1337_v8 }
 0x8c9   : > { %1785 = vmatmul.mubr.msk.bf16.vlgmr.msra.gmra.mxu1 %vm466_vm0, %v1338_v9 }
 0x989   : > { %v1399_v17 = vpop.f32.mrf.mxu1 }
 0x98a   : > { %v1400_v18 = vadd.f32 %v1661_v16, %v1399_v17 }
 0x98b   : > { %v1786_v19 = vpop.f32.mrf.mxu1 }
 0x98c   : > { %v1406_v20 = vmul.f32 0.044715, %v1400_v18  ;;  %v1405_v7 = vmul.f32 0.5, %v1400_v18 }
 0x98d   : > { %v1402_v27 = vpop.f32.mrf.mxu1 }
 0x98e   : > { %v1407_v29 = vmul.f32 %v1406_v20, %v1400_v18 }
 0x98f   : > { %v1787_v32 = vpop.f32.mrf.mxu1 }
 0x990   : > { %v1408_v34 = vmul.f32 %v1407_v29, %v1400_v18 }
 0x992   : > { %v1409_v35 = vadd.f32 %v1408_v34, %v1400_v18 }
 0x994   : > { %v1410_v37 = vmul.f32 0.7978846, %v1409_v35 }
 0x996   : > { %1932 = vtanh.f32 %v1410_v37 }
 0x9a3   : > { %v1933_v45 = vpop.eup %1932 }
 0x9a4   : > { %v1412_v21 = vadd.f32 1.0, %v1933_v45 }
 0x9a6   : > { %v1413_v22 = vmul.f32 %v1412_v21, %v1405_v7 }
 0x9a8   : > { %v1414_v23 = vpack.c.bf16 %v1413_v22, %v1413_v22 }
 0x9aa   : > { %1805 = vmatmul.mubr.bf16.vlgmr.msra.gmra.mxu0 %v1414_v23 }
 0xa6a   : > { %v1520_v25 = vpop.f32.mrf.mxu0 }
 0xa6b   : > { %v1521_v26 = vadd.f32 %v1665_v24, %v1520_v25 }
 0xa6c   : > { %v1806_v28 = vpop.f32.mrf.mxu0 }
 0xa6d   : > { %v1526_v30 = vadd.f32 %v1521_v26, %v2400_v50 }
 0xa6e   : > { %v1523_v31 = vpop.f32.mrf.mxu0 }
 0xa6f   : > { %1527 = vst.msk [vmem:[%s2543_s0] sm:$0xff] %vm466_vm0, %v1526_v30 }
 0xa70   : > { %v1807_v33 = vpop.f32.mrf.mxu0 }
 0xa71   : > { %1947 = shalt.err (!%p1944_p7)
}
 0xa72   : > { %s1948_s19 = scalar_lea.hbm %s2464_s24, 128  ;;  %s1952_s23 = scalar_lea.hbm %s2528_s13, 256 }
 0xa73   : > { %p1949_p9 = scmp.ne.s32.totalorder %s2464_s24, %s1948_s19  ;;  %p1953_p12 = scmp.lt.s32.totalorder %s2464_s24, %s2528_s13 }
 0xa74   : > { %p1954_p13 = scmp.lt.s32.totalorder %s1952_s23, %s1948_s19 }
 0xa75   : > { %p1950_p10 = pnand %p1949_p9, %p2146_p4 }
 0xa76   : > { %p1955_p0 = por %p1954_p13, %p1953_p12 }
 0xa77   : > { %p1951_p11 = pneg %p1950_p10 }
 0xa79   : > { %p1956_p1 = pnand %p1955_p0, %p1951_p11 }
 0xa7b   : > { %1959 = shalt.err (!%p1956_p1)
}
 0xa7c   : > { %1808 = dma.vmem_to_hbm [thread:$0]  (%p2146_p4), %s2466_s22, 128, %s2464_s24, %s1529_s15  }
 0xa7d PF: > { %p1814_p2 = scmp.ge.s32.totalorder %s2014_s30, 2  ;;  %s1555_s1 = sand.u32 1, %s1994_s25  }
 0xa7e   : > { %s1556_s2 = scalar_lea.sflag [#allocation8], %s1555_s1 }
 0xa7f   : > { %p1811_p3 = pnand %p1814_p2, %p2153_p8 }
 0xa81   : > { %p1812_p5 = pneg %p1811_p3 }
 0xa83   : > { %1989 = dma.done.wait (%p1812_p5), %s1556_s2, 128  }
 0xa84   : > { %1991 = vsyncadd (%p1812_p5), %s1556_s2, 4294967168  ;;  %s26_s30 = sadd.s32 1, %s2014_s30   ;;  %s2545_s25 = smov %s1998_s26 }
 0xa85   : > { %p23_p6 = scmp.ge.s32.totalorder %s26_s30, 4   ;;  %s2546_s26 = smov %s2002_s27 }
 0xa86   : > { %s2547_s27 = smov %s2159_s21  ;;  %s2548_s28 = smov %s2010_s29 }
 0xa87   : > { %s2549_s29 = smov %s2551_s16  ;;  %25 = sbr.rel (!%p23_p6) target bundleno = 9 (0x9), region = 129 }
 0xa8c   :  { %1561 = vsyncpa [#allocation8], 1 }
 0xa8d   :  { %1563 = vsyncpa [#allocation8 + $0x1], 1 }

</bundles_post_ra>
